<compile_context>
chip_gen: v5e
topology: v5e:2x2
jax: 0.10.0
libtpu: 0.0.40
codegen_flags: <defaults>
</compile_context>

<pallas_src>
import functools
import math
import random

import jax
import jax.numpy as jnp
from jax import lax
from jax.experimental import pallas as pl
from jax.experimental.pallas import tpu as pltpu


_NEG = -1e30
_VMEM_LIMIT = 48 * 1024 * 1024  # < v7x 64 MiB physical, > v5e/v6e defaults


def _cdiv(a, b):
    return -(-a // b)


def _round_up(x, m):
    return _cdiv(x, m) * m


# ----------------------------------------------------------------------------
# Deterministic parameter sampling (mirrors the module's random structure).
# ----------------------------------------------------------------------------
def _sample_params(seed, burn_intensity_min=0.2, burn_intensity_max=0.8):
    rng = random.Random(seed)
    p = {}

    # _create_random_burn_mask pattern weights
    p["edge_w"] = rng.uniform(0.3, 1.0) if rng.random() < 0.8 else 0.0
    p["spot_w"] = rng.uniform(0.5, 1.0)
    p["streak_w"] = rng.uniform(0.2, 0.8) if rng.random() < 0.4 else 0.0

    # _create_edge_burn_mask params
    if p["edge_w"] > 0:
        p["edge_threshold"] = rng.uniform(0.6, 0.8)
        if rng.random() < 0.3:
            p["edge_side"] = rng.choice(["left", "right", "top", "bottom"])
            p["edge_side_mult"] = rng.uniform(1.2, 1.5)
        else:
            p["edge_side"] = None
            p["edge_side_mult"] = 1.0
    else:
        p["edge_side"] = None
        p["edge_side_mult"] = 1.0
        p["edge_threshold"] = 0.7

    # _create_spot_burn_mask params
    spots = []
    if p["spot_w"] > 0:
        num_spots = rng.randint(3, 10)
        for _ in range(num_spots):
            r = rng.uniform(0.3, 1.0)
            theta = rng.uniform(0.0, 2.0 * math.pi)
            sx, sy = r * math.cos(theta), r * math.sin(theta)
            if rng.random() < 0.3:
                xs, ys = rng.uniform(0.5, 1.5), rng.uniform(0.5, 1.5)
            else:
                xs, ys = 1.0, 1.0
            radius = rng.uniform(0.05, 0.25)
            intensity = rng.uniform(0.6, 1.0)
            falloff = rng.uniform(1.0, 3.0)
            use_exp = rng.random() < 0.5
            spots.append(dict(sx=sx, sy=sy, xs=xs, ys=ys, radius=radius,
                              intensity=intensity, falloff=falloff,
                              use_exp=use_exp))
    p["spots"] = spots

    # _create_streak_burn_mask params
    streaks = []
    if p["streak_w"] > 0:
        num_streaks = rng.randint(1, 4)
        for _ in range(num_streaks):
            theta = rng.uniform(0.0, math.pi)
            rho = rng.uniform(-0.8, 0.8)
            width = rng.uniform(0.05, 0.15)
            intensity = rng.uniform(0.7, 1.0)
            streaks.append(dict(cos=math.cos(theta), sin=math.sin(theta),
                                rho=rho, width=width, intensity=intensity))
    p["streaks"] = streaks

    # forward()-level params
    p["burn_intensity"] = rng.uniform(burn_intensity_min, burn_intensity_max)
    p["apply_texture"] = rng.random() < 0.7
    return p


def _burn_color(level, color_variation=True):
    """Mirrors _create_burn_color (returns a Python RGB tuple)."""
    if color_variation:
        if level < 0.2:
            return (0.85, 0.65, 0.45)
        elif level < 0.5:
            return (0.65, 0.4, 0.25)
        elif level < 0.8:
            return (0.35, 0.2, 0.15)
        else:
            return (0.15, 0.1, 0.1)
    else:
        return (0.8 - level * 0.6, 0.5 - level * 0.4, 0.4 - level * 0.35)


def _spot_peak(params, H, W):
    """Exact max of the combined spot mask over the HxW grid (noise-free,
    separable -> the nearest grid point to each spot centre is the argmax)."""
    if not params["spots"]:
        return 0.0
    dh = float(max(H - 1, 1))
    dw = float(max(W - 1, 1))
    peak = 0.0
    for sp in params["spots"]:
        jx = min(max(int(round((sp["sx"] + 1.0) * dw / 2.0)), 0), W - 1)
        iy = min(max(int(round((sp["sy"] + 1.0) * dh / 2.0)), 0), H - 1)
        gx = -1.0 + 2.0 * jx / dw
        gy = -1.0 + 2.0 * iy / dh
        d2 = ((gx - sp["sx"]) / sp["xs"]) ** 2 + ((gy - sp["sy"]) / sp["ys"]) ** 2
        if sp["use_exp"]:
            v = math.exp(-math.sqrt(d2) * sp["falloff"] / sp["radius"]) * sp["intensity"]
        else:
            v = max(0.0, 1.0 - d2 / (sp["radius"] ** 2)) * sp["intensity"]
        peak = max(peak, v)
    return peak


# ----------------------------------------------------------------------------
# Pass 1: global reduction statistics (edge min/max, per-streak max).
# ----------------------------------------------------------------------------
def _reduction_kernel(*args, params, H, W, tile_h, has_edge, n_streaks):
    idx = 0
    enoise_ref = None
    snoise_ref = None
    if has_edge:
        enoise_ref = args[idx]; idx += 1
    if n_streaks:
        snoise_ref = args[idx]; idx += 1
    red_ref = args[idx]

    i = pl.program_id(0)

    @pl.when(i == 0)
    def _init():
        red_ref[...] = jnp.full((1, 128), _NEG, jnp.float32)

    wp = enoise_ref.shape[-1] if enoise_ref is not None else snoise_ref.shape[-1]
    row = lax.broadcasted_iota(jnp.int32, (tile_h, wp), 0) + i * tile_h
    col = lax.broadcasted_iota(jnp.int32, (tile_h, wp), 1)
    valid = (row < H) & (col < W)

    dh = float(max(H - 1, 1))
    dw = float(max(W - 1, 1))
    y = -1.0 + 2.0 * row.astype(jnp.float32) / dh
    x = -1.0 + 2.0 * col.astype(jnp.float32) / dw

    lane = lax.broadcasted_iota(jnp.int32, (1, 128), 1)
    vec = jnp.full((1, 128), _NEG, jnp.float32)

    def put(v, k, val):
        return jnp.where(lane == k, val, v)

    def masked_max(arr, m):
        return jnp.max(jnp.where(m, arr, _NEG))

    if has_edge:
        a = jnp.sqrt(x * x + y * y) + enoise_ref[...] * 0.05
        vec = put(vec, 0, masked_max(-a, valid))     # lane 0: -(min of a)
        vec = put(vec, 1, masked_max(a, valid))      # lane 1:  max of a
        side = params["edge_side"]
        if side is not None:
            if side == "left":
                sm = x < -0.3
            elif side == "right":
                sm = x > 0.3
            elif side == "top":
                sm = y < -0.3
            else:
                sm = y > 0.3
            vec = put(vec, 2, masked_max(a, valid & sm))
            vec = put(vec, 3, masked_max(a, valid & jnp.logical_not(sm)))

    for k in range(n_streaks):
        st = params["streaks"][k]
        dline = x * st["cos"] + y * st["sin"] - st["rho"]
        smv = jnp.exp(dline * dline * (-1.0 / (2.0 * st["width"] ** 2))) * st["intensity"]
        smv = smv * (1.0 + snoise_ref[k] * 0.03)
        vec = put(vec, 8 + k, masked_max(smv, valid))

    red_ref[...] = jnp.maximum(red_ref[...], vec)


# ----------------------------------------------------------------------------
# Pass 2: mask construction + burn application (per H-tile, lane-dense W).
# ----------------------------------------------------------------------------
def _burn_kernel(*args, params, H, W, tile_h, color_variation,
                 has_edge, n_streaks, has_tex, levels, has_charred):
    idx = 0
    scal_ref = args[idx]; idx += 1          # SMEM: [ew_min, inv_range, inv_mmax, ...]
    img_ref = args[idx]; idx += 1
    enoise_ref = None
    snoise_ref = None
    tnoise_ref = None
    if has_edge:
        enoise_ref = args[idx]; idx += 1
    if n_streaks:
        snoise_ref = args[idx]; idx += 1
    if has_tex:
        tnoise_ref = args[idx]; idx += 1
    out_ref = args[idx]

    wp = img_ref.shape[-1]
    i = pl.program_id(0)
    row = lax.broadcasted_iota(jnp.int32, (tile_h, wp), 0) + i * tile_h
    col = lax.broadcasted_iota(jnp.int32, (tile_h, wp), 1)
    dh = float(max(H - 1, 1))
    dw = float(max(W - 1, 1))
    y = -1.0 + 2.0 * row.astype(jnp.float32) / dh
    x = -1.0 + 2.0 * col.astype(jnp.float32) / dw

    inv_mmax = scal_ref[2]
    bi = params["burn_intensity"]

    mask = jnp.zeros((tile_h, wp), jnp.float32)

    # ---- edge burn mask -----------------------------------------------------
    if has_edge:
        ew_min = scal_ref[0]
        inv_range = scal_ref[1]
        a = jnp.sqrt(x * x + y * y) + enoise_ref[...] * 0.05
        ew = (jnp.exp(3.0 * (a - params["edge_threshold"])) - ew_min) * inv_range
        side = params["edge_side"]
        if side is not None:
            if side == "left":
                sm = x < -0.3
            elif side == "right":
                sm = x > 0.3
            elif side == "top":
                sm = y < -0.3
            else:
                sm = y > 0.3
            ew = jnp.where(sm, ew * params["edge_side_mult"], ew)
        mask = jnp.maximum(mask, ew * params["edge_w"])

    # ---- spot burn mask (exp spots folded into one exp; no sqrt for quads) --
    spots = params["spots"] if params["spot_w"] > 0 else []
    if spots:
        spots_m = jnp.zeros((tile_h, wp), jnp.float32)
        exp_arg = None
        for sp in spots:
            dx = (x - sp["sx"]) * (1.0 / sp["xs"])
            dy = (y - sp["sy"]) * (1.0 / sp["ys"])
            d2 = dx * dx + dy * dy
            if sp["use_exp"]:
                arg = (-jnp.sqrt(d2)) * (sp["falloff"] / sp["radius"]) \
                      + math.log(sp["intensity"])
                exp_arg = arg if exp_arg is None else jnp.maximum(exp_arg, arg)
            else:
                q = jnp.maximum(0.0, 1.0 - d2 * (1.0 / sp["radius"] ** 2)) * sp["intensity"]
                spots_m = jnp.maximum(spots_m, q)
        if exp_arg is not None:
            spots_m = jnp.maximum(spots_m, jnp.exp(exp_arg))
        mask = jnp.maximum(mask, spots_m * params["spot_w"])

    # ---- streak burn mask ---------------------------------------------------
    if n_streaks:
        st_m = jnp.zeros((tile_h, wp), jnp.float32)
        for k in range(n_streaks):
            st = params["streaks"][k]
            dline = x * st["cos"] + y * st["sin"] - st["rho"]
            smv = jnp.exp(dline * dline * (-1.0 / (2.0 * st["width"] ** 2))) * st["intensity"]
            smv = smv * (1.0 + snoise_ref[k] * 0.03)
            st_m = jnp.maximum(st_m, smv)
        mask = jnp.maximum(mask, st_m * params["streak_w"])

    # normalize (guarded on host via inv_mmax) and scale by burn intensity
    bm = mask * (inv_mmax * bi)

    # ---- per-pixel burn-level classification (dead levels stripped) ---------
    active = None
    bf = None
    col_rgb = None
    if levels:
        bf = jnp.zeros((tile_h, wp), jnp.float32)
        col_rgb = [jnp.zeros((tile_h, wp), jnp.float32) for _ in range(3)]
        for lv in levels:
            in_rng = (bm > lv * 0.8) & (bm <= lv)
            active = in_rng if active is None else (active | in_rng)
            bf = jnp.where(in_rng, lv * bi, bf)
            color = _burn_color(lv, color_variation)
            for c in range(3):
                col_rgb[c] = jnp.where(in_rng, color[c], col_rgb[c])

    charred = (bm > 0.8) if has_charred else None
    tmask = None
    tex_factor = None
    if has_tex:
        tmask = bm > 0.3
        tex_factor = 1.0 + tnoise_ref[...] * 0.05

    one_minus_bf = (1.0 - bf) if bf is not None else None
    for c in range(3):
        img_c = img_ref[c]
        res = img_c
        if active is not None:
            res = jnp.where(active, img_c * one_minus_bf + col_rgb[c] * bf, res)
        if charred is not None:
            res = jnp.where(charred, 0.05, res)
        if tex_factor is not None:
            res = jnp.where(tmask, res * tex_factor, res)
        out_ref[c] = jnp.clip(res, 0.0, 1.0)


# ----------------------------------------------------------------------------
# Tile-size selection
# ----------------------------------------------------------------------------
def _pick_tile_h(H8, Wp, n_io_planes, user_tile_h):
    if user_tile_h is not None:
        th = min(_round_up(max(int(user_tile_h), 8), 8), H8)
    else:
        # double-buffered IO blocks + ~16 planes of live temporaries <= 32 MiB
        budget = 32 * 1024 * 1024
        per_row = (2 * n_io_planes + 16) * Wp * 4
        th = budget // per_row
        th = max(8, min(512, th, H8))
        th = max(8, (th // 8) * 8)
    grid_h = _cdiv(H8, th)
    th = _round_up(_cdiv(H8, grid_h), 8)      # re-balance to minimize padding
    grid_h = _cdiv(H8, th)
    return th, grid_h


# ----------------------------------------------------------------------------
# Wrapper
# ----------------------------------------------------------------------------
def enhanced_pizza_burning_effect(img, key, *, seed=0,
                                  burn_intensity_min=0.2,
                                  burn_intensity_max=0.8,
                                  burn_pattern="random",
                                  color_variation=True,
                                  tile_h=None):
    """img: (3, H, W) float32 in [0, 1]. Returns the burned image, same shape."""
    if burn_pattern != "random":
        # TODO(synk): single-pattern modes skip the combined normalization.
        raise NotImplementedError("only burn_pattern='random' is implemented")

    C, H, W = img.shape
    assert C == 3, "expected RGB image (3, H, W)"
    img = jnp.asarray(img, jnp.float32)

    params = _sample_params(seed, burn_intensity_min, burn_intensity_max)
    bi = params["burn_intensity"]
    has_edge = params["edge_w"] > 0
    n_streaks = len(params["streaks"]) if params["streak_w"] > 0 else 0
    has_tex = bool(params["apply_texture"]) and bi > 0.3         # dead if bi<=0.3
    levels = tuple(lv for lv in (0.25, 0.5, 0.75, 1.0) if bi > lv * 0.8)
    has_charred = bi > 0.8                                       # dead for default range

    # --- padded / tiled geometry (lane-dense W, H tiled in multiples of 8) ---
    Wp = _round_up(max(W, 1), 128)
    H8 = _round_up(max(H, 1), 8)
    n_io_planes = 6 + (1 if has_edge else 0) + n_streaks + (1 if has_tex else 0)
    th, grid_h = _pick_tile_h(H8, Wp, n_io_planes, tile_h)
    Hp = grid_h * th

    img_p = jnp.pad(img, ((0, 0), (0, Hp - H), (0, Wp - W)))

    # only the noise planes that are actually used are generated / DMA'd
    k1, k2, k3 = jax.random.split(key, 3)
    enoise = jax.random.normal(k1, (Hp, Wp), jnp.float32) if has_edge else None
    snoise = (jax.random.normal(k2, (n_streaks, Hp, Wp), jnp.float32)
              if n_streaks else None)
    tnoise = jax.random.normal(k3, (Hp, Wp), jnp.float32) if has_tex else None

    cparams_red = pltpu.CompilerParams(dimension_semantics=("arbitrary",),
                                       vmem_limit_bytes=_VMEM_LIMIT)
    cparams_burn = pltpu.CompilerParams(dimension_semantics=("parallel",),
                                        vmem_limit_bytes=_VMEM_LIMIT)

    # --- pass 1: global reductions (only if edge or streak present) ----------
    red = None
    if has_edge or n_streaks:
        red_in = []
        red_specs = []
        if has_edge:
            red_in.append(enoise)
            red_specs.append(pl.BlockSpec((th, Wp), lambda i: (i, 0)))
        if n_streaks:
            red_in.append(snoise)
            red_specs.append(pl.BlockSpec((n_streaks, th, Wp), lambda i: (0, i, 0)))
        red_kernel = functools.partial(_reduction_kernel, params=params, H=H, W=W,
                                       tile_h=th, has_edge=has_edge,
                                       n_streaks=n_streaks)
        red = pl.pallas_call(
            red_kernel,
            out_shape=jax.ShapeDtypeStruct((1, 128), jnp.float32),
            grid=(grid_h,),
            in_specs=red_specs,
            out_specs=pl.BlockSpec((1, 128), lambda i: (0, 0)),
            compiler_params=cparams_red,
        )(*red_in)

    # --- derive the 3 normalization scalars -----------------------------------
    spot_contrib = params["spot_w"] * _spot_peak(params, H, W)   # analytic, exact
    ew_min = 0.0
    inv_range = 0.0
    contribs = []
    if has_edge:
        thr = params["edge_threshold"]
        amin = -red[0, 0]
        amax = red[0, 1]
        ew_min = jnp.exp(3.0 * (amin - thr))
        ew_max = jnp.exp(3.0 * (amax - thr))
        rng_ = ew_max - ew_min
        # guard the (max-min) normalization against a zero range (torch would NaN)
        inv_range = jnp.where(rng_ > 0, 1.0 / jnp.where(rng_ > 0, rng_, 1.0), 0.0)
        if params["edge_side"] is not None:
            ps = (jnp.exp(3.0 * (red[0, 2] - thr)) - ew_min) * params["edge_side_mult"]
            pn = jnp.exp(3.0 * (red[0, 3] - thr)) - ew_min
            edge_peak = jnp.maximum(ps, pn) * inv_range
        else:
            edge_peak = rng_ * inv_range
        contribs.append(params["edge_w"] * edge_peak)
    if n_streaks:
        smax = red[0, 8]
        for k in range(1, n_streaks):
            smax = jnp.maximum(smax, red[0, 8 + k])
        contribs.append(params["streak_w"] * jnp.maximum(0.0, smax))

    mmax = jnp.asarray(spot_contrib, jnp.float32)
    for c in contribs:
        mmax = jnp.maximum(mmax, c)
    inv_mmax = jnp.where(mmax > 0, 1.0 / jnp.where(mmax > 0, mmax, 1.0), 1.0)

    scal = jnp.stack([jnp.asarray(v, jnp.float32) for v in
                      (ew_min, inv_range, inv_mmax, 0.0, 0.0, 0.0, 0.0, 0.0)])

    # --- pass 2: burn application ---------------------------------------------
    burn_in = [scal, img_p]
    burn_specs = [pl.BlockSpec(memory_space=pltpu.MemorySpace.SMEM),
                  pl.BlockSpec((3, th, Wp), lambda i: (0, i, 0))]
    if has_edge:
        burn_in.append(enoise)
        burn_specs.append(pl.BlockSpec((th, Wp), lambda i: (i, 0)))
    if n_streaks:
        burn_in.append(snoise)
        burn_specs.append(pl.BlockSpec((n_streaks, th, Wp), lambda i: (0, i, 0)))
    if has_tex:
        burn_in.append(tnoise)
        burn_specs.append(pl.BlockSpec((th, Wp), lambda i: (i, 0)))

    burn_kernel = functools.partial(
        _burn_kernel, params=params, H=H, W=W, tile_h=th,
        color_variation=color_variation, has_edge=has_edge,
        n_streaks=n_streaks, has_tex=has_tex, levels=levels,
        has_charred=has_charred)

    out_p = pl.pallas_call(
        burn_kernel,
        out_shape=jax.ShapeDtypeStruct((3, Hp, Wp), jnp.float32),
        grid=(grid_h,),
        in_specs=burn_specs,
        out_specs=pl.BlockSpec((3, th, Wp), lambda i: (0, i, 0)),
        compiler_params=cparams_burn,
    )(*burn_in)

    return out_p[:, :H, :W]


if __name__ == "__main__":
    key = jax.random.PRNGKey(0)
    k_img, k_n0, k_n1 = jax.random.split(key, 3)
    # Small deterministic RGB "pizza" image (3, 64, 96) in [0, 1].
    img = jax.random.uniform(k_img, (3, 64, 96), jnp.float32)

    # seed=0 draws a spot-only pattern (no reduction pass needed).
    out0 = enhanced_pizza_burning_effect(img, k_n0, seed=0)

    # seed=1 draws edge + spot + streak (exercises the reduction pass),
    # jitted end-to-end and forced onto a multi-tile grid (tile_h=16).
    fwd = jax.jit(functools.partial(enhanced_pizza_burning_effect,
                                    seed=1, tile_h=16))
    out1 = fwd(img, k_n1)

    out0, out1 = jax.block_until_ready((out0, out1))
    for r in (out0, out1):
        assert r.shape == img.shape and r.dtype == jnp.float32
        assert bool(jnp.all(jnp.isfinite(r)))
        assert bool(jnp.all(r >= 0.0)) and bool(jnp.all(r <= 1.0))
    print("KERNEL_OK")
</pallas_src>

<mosaic_0001>
module attributes {stable_mosaic.version = 11 : i64} {
  func.func @_burn_kernel(%arg0: i32, %arg1: memref<8xf32, #tpu.memory_space<smem>>, %arg2: memref<3x64x128xf32, #tpu.memory_space<vmem>>, %arg3: memref<3x64x128xf32, #tpu.memory_space<vmem>>) attributes {dimension_semantics = [#tpu.dimension_semantics<parallel>], iteration_bounds = array<i64: 1>, scalar_prefetch = 0 : i64, scratch_operands = 0 : i64, tpu.core_type = #tpu.core_type<tc>, window_params = [{transform_indices = @transform_0, window_bounds = array<i64: 8>}, {transform_indices = @transform_1, window_bounds = array<i64: 3, 64, 128>}, {transform_indices = @transform_2, window_bounds = array<i64: 3, 64, 128>}]} {
    %0 = tpu.iota {dimensions = array<i32: 0>} : vector<64x128xi32>
    %c64_i32 = arith.constant 64 : i32
    %1 = arith.muli %arg0, %c64_i32 : i32
    %2 = vector.broadcast %1 : i32 to vector<64x128xi32>
    %3 = arith.addi %0, %2 : vector<64x128xi32>
    %4 = tpu.iota {dimensions = array<i32: 1>} : vector<64x128xi32>
    %5 = arith.sitofp %3 : vector<64x128xi32> to vector<64x128xf32>
    %cst = arith.constant 2.000000e+00 : f32
    %6 = vector.broadcast %cst : f32 to vector<64x128xf32>
    %7 = arith.mulf %6, %5 : vector<64x128xf32>
    %cst_0 = arith.constant 6.300000e+01 : f32
    %8 = vector.broadcast %cst_0 : f32 to vector<64x128xf32>
    %9 = arith.divf %7, %8 : vector<64x128xf32>
    %cst_1 = arith.constant -1.000000e+00 : f32
    %10 = vector.broadcast %cst_1 : f32 to vector<64x128xf32>
    %11 = arith.addf %10, %9 : vector<64x128xf32>
    %12 = arith.sitofp %4 : vector<64x128xi32> to vector<64x128xf32>
    %cst_2 = arith.constant 2.000000e+00 : f32
    %13 = vector.broadcast %cst_2 : f32 to vector<64x128xf32>
    %14 = arith.mulf %13, %12 : vector<64x128xf32>
    %cst_3 = arith.constant 9.500000e+01 : f32
    %15 = vector.broadcast %cst_3 : f32 to vector<64x128xf32>
    %16 = arith.divf %14, %15 : vector<64x128xf32>
    %cst_4 = arith.constant -1.000000e+00 : f32
    %17 = vector.broadcast %cst_4 : f32 to vector<64x128xf32>
    %18 = arith.addf %17, %16 : vector<64x128xf32>
    %c2 = arith.constant 2 : index
    %19 = memref.load %arg1[%c2] : memref<8xf32, #tpu.memory_space<smem>>
    %cst_5 = arith.constant 0.000000e+00 : f32
    %20 = vector.broadcast %cst_5 : f32 to vector<64x128xf32>
    %cst_6 = arith.constant 0.000000e+00 : f32
    %21 = vector.broadcast %cst_6 : f32 to vector<64x128xf32>
    %cst_7 = arith.constant -0.972013473 : f32
    %22 = vector.broadcast %cst_7 : f32 to vector<64x128xf32>
    %23 = arith.subf %18, %22 : vector<64x128xf32>
    %cst_8 = arith.constant 1.000000e+00 : f32
    %24 = vector.broadcast %cst_8 : f32 to vector<64x128xf32>
    %25 = arith.mulf %23, %24 : vector<64x128xf32>
    %cst_9 = arith.constant 0.0861690193 : f32
    %26 = vector.broadcast %cst_9 : f32 to vector<64x128xf32>
    %27 = arith.subf %11, %26 : vector<64x128xf32>
    %cst_10 = arith.constant 1.000000e+00 : f32
    %28 = vector.broadcast %cst_10 : f32 to vector<64x128xf32>
    %29 = arith.mulf %27, %28 : vector<64x128xf32>
    %30 = arith.mulf %25, %25 : vector<64x128xf32>
    %31 = arith.mulf %29, %29 : vector<64x128xf32>
    %32 = arith.addf %30, %31 : vector<64x128xf32>
    %cst_11 = arith.constant 21.4393101 : f32
    %33 = vector.broadcast %cst_11 : f32 to vector<64x128xf32>
    %34 = arith.mulf %32, %33 : vector<64x128xf32>
    %cst_12 = arith.constant 1.000000e+00 : f32
    %35 = vector.broadcast %cst_12 : f32 to vector<64x128xf32>
    %36 = arith.subf %35, %34 : vector<64x128xf32>
    %cst_13 = arith.constant 0.000000e+00 : f32
    %37 = vector.broadcast %cst_13 : f32 to vector<64x128xf32>
    %38 = arith.maximumf %37, %36 : vector<64x128xf32>
    %cst_14 = arith.constant 0.987119972 : f32
    %39 = vector.broadcast %cst_14 : f32 to vector<64x128xf32>
    %40 = arith.mulf %38, %39 : vector<64x128xf32>
    %41 = arith.maximumf %21, %40 : vector<64x128xf32>
    %cst_15 = arith.constant 0.29028514 : f32
    %42 = vector.broadcast %cst_15 : f32 to vector<64x128xf32>
    %43 = arith.subf %18, %42 : vector<64x128xf32>
    %cst_16 = arith.constant 1.68115044 : f32
    %44 = vector.broadcast %cst_16 : f32 to vector<64x128xf32>
    %45 = arith.mulf %43, %44 : vector<64x128xf32>
    %cst_17 = arith.constant 0.347652018 : f32
    %46 = vector.broadcast %cst_17 : f32 to vector<64x128xf32>
    %47 = arith.subf %11, %46 : vector<64x128xf32>
    %cst_18 = arith.constant 0.769584417 : f32
    %48 = vector.broadcast %cst_18 : f32 to vector<64x128xf32>
    %49 = arith.mulf %47, %48 : vector<64x128xf32>
    %50 = arith.mulf %45, %45 : vector<64x128xf32>
    %51 = arith.mulf %49, %49 : vector<64x128xf32>
    %52 = arith.addf %50, %51 : vector<64x128xf32>
    %cst_19 = arith.constant 16.3312206 : f32
    %53 = vector.broadcast %cst_19 : f32 to vector<64x128xf32>
    %54 = arith.mulf %52, %53 : vector<64x128xf32>
    %cst_20 = arith.constant 1.000000e+00 : f32
    %55 = vector.broadcast %cst_20 : f32 to vector<64x128xf32>
    %56 = arith.subf %55, %54 : vector<64x128xf32>
    %cst_21 = arith.constant 0.000000e+00 : f32
    %57 = vector.broadcast %cst_21 : f32 to vector<64x128xf32>
    %58 = arith.maximumf %57, %56 : vector<64x128xf32>
    %cst_22 = arith.constant 0.813025474 : f32
    %59 = vector.broadcast %cst_22 : f32 to vector<64x128xf32>
    %60 = arith.mulf %58, %59 : vector<64x128xf32>
    %61 = arith.maximumf %41, %60 : vector<64x128xf32>
    %cst_23 = arith.constant 0.327761233 : f32
    %62 = vector.broadcast %cst_23 : f32 to vector<64x128xf32>
    %63 = arith.subf %18, %62 : vector<64x128xf32>
    %cst_24 = arith.constant 0.74048084 : f32
    %64 = vector.broadcast %cst_24 : f32 to vector<64x128xf32>
    %65 = arith.mulf %63, %64 : vector<64x128xf32>
    %cst_25 = arith.constant 0.234263152 : f32
    %66 = vector.broadcast %cst_25 : f32 to vector<64x128xf32>
    %67 = arith.subf %11, %66 : vector<64x128xf32>
    %cst_26 = arith.constant 1.2045331 : f32
    %68 = vector.broadcast %cst_26 : f32 to vector<64x128xf32>
    %69 = arith.mulf %67, %68 : vector<64x128xf32>
    %70 = arith.mulf %65, %65 : vector<64x128xf32>
    %71 = arith.mulf %69, %69 : vector<64x128xf32>
    %72 = arith.addf %70, %71 : vector<64x128xf32>
    %cst_27 = arith.constant 38.1214828 : f32
    %73 = vector.broadcast %cst_27 : f32 to vector<64x128xf32>
    %74 = arith.mulf %72, %73 : vector<64x128xf32>
    %cst_28 = arith.constant 1.000000e+00 : f32
    %75 = vector.broadcast %cst_28 : f32 to vector<64x128xf32>
    %76 = arith.subf %75, %74 : vector<64x128xf32>
    %cst_29 = arith.constant 0.000000e+00 : f32
    %77 = vector.broadcast %cst_29 : f32 to vector<64x128xf32>
    %78 = arith.maximumf %77, %76 : vector<64x128xf32>
    %cst_30 = arith.constant 0.74151653 : f32
    %79 = vector.broadcast %cst_30 : f32 to vector<64x128xf32>
    %80 = arith.mulf %78, %79 : vector<64x128xf32>
    %81 = arith.maximumf %61, %80 : vector<64x128xf32>
    %cst_31 = arith.constant -0.41922164 : f32
    %82 = vector.broadcast %cst_31 : f32 to vector<64x128xf32>
    %83 = arith.subf %18, %82 : vector<64x128xf32>
    %cst_32 = arith.constant 1.000000e+00 : f32
    %84 = vector.broadcast %cst_32 : f32 to vector<64x128xf32>
    %85 = arith.mulf %83, %84 : vector<64x128xf32>
    %cst_33 = arith.constant -0.143601328 : f32
    %86 = vector.broadcast %cst_33 : f32 to vector<64x128xf32>
    %87 = arith.subf %11, %86 : vector<64x128xf32>
    %cst_34 = arith.constant 1.000000e+00 : f32
    %88 = vector.broadcast %cst_34 : f32 to vector<64x128xf32>
    %89 = arith.mulf %87, %88 : vector<64x128xf32>
    %90 = arith.mulf %85, %85 : vector<64x128xf32>
    %91 = arith.mulf %89, %89 : vector<64x128xf32>
    %92 = arith.addf %90, %91 : vector<64x128xf32>
    %cst_35 = arith.constant 42.017765 : f32
    %93 = vector.broadcast %cst_35 : f32 to vector<64x128xf32>
    %94 = arith.mulf %92, %93 : vector<64x128xf32>
    %cst_36 = arith.constant 1.000000e+00 : f32
    %95 = vector.broadcast %cst_36 : f32 to vector<64x128xf32>
    %96 = arith.subf %95, %94 : vector<64x128xf32>
    %cst_37 = arith.constant 0.000000e+00 : f32
    %97 = vector.broadcast %cst_37 : f32 to vector<64x128xf32>
    %98 = arith.maximumf %97, %96 : vector<64x128xf32>
    %cst_38 = arith.constant 0.624911844 : f32
    %99 = vector.broadcast %cst_38 : f32 to vector<64x128xf32>
    %100 = arith.mulf %98, %99 : vector<64x128xf32>
    %101 = arith.maximumf %81, %100 : vector<64x128xf32>
    %cst_39 = arith.constant 0.195909068 : f32
    %102 = vector.broadcast %cst_39 : f32 to vector<64x128xf32>
    %103 = arith.subf %18, %102 : vector<64x128xf32>
    %cst_40 = arith.constant 1.000000e+00 : f32
    %104 = vector.broadcast %cst_40 : f32 to vector<64x128xf32>
    %105 = arith.mulf %103, %104 : vector<64x128xf32>
    %cst_41 = arith.constant -0.308312565 : f32
    %106 = vector.broadcast %cst_41 : f32 to vector<64x128xf32>
    %107 = arith.subf %11, %106 : vector<64x128xf32>
    %cst_42 = arith.constant 1.000000e+00 : f32
    %108 = vector.broadcast %cst_42 : f32 to vector<64x128xf32>
    %109 = arith.mulf %107, %108 : vector<64x128xf32>
    %110 = arith.mulf %105, %105 : vector<64x128xf32>
    %111 = arith.mulf %109, %109 : vector<64x128xf32>
    %112 = arith.addf %110, %111 : vector<64x128xf32>
    %cst_43 = arith.constant 23.3356133 : f32
    %113 = vector.broadcast %cst_43 : f32 to vector<64x128xf32>
    %114 = arith.mulf %112, %113 : vector<64x128xf32>
    %cst_44 = arith.constant 1.000000e+00 : f32
    %115 = vector.broadcast %cst_44 : f32 to vector<64x128xf32>
    %116 = arith.subf %115, %114 : vector<64x128xf32>
    %cst_45 = arith.constant 0.000000e+00 : f32
    %117 = vector.broadcast %cst_45 : f32 to vector<64x128xf32>
    %118 = arith.maximumf %117, %116 : vector<64x128xf32>
    %cst_46 = arith.constant 0.850106358 : f32
    %119 = vector.broadcast %cst_46 : f32 to vector<64x128xf32>
    %120 = arith.mulf %118, %119 : vector<64x128xf32>
    %121 = arith.maximumf %101, %120 : vector<64x128xf32>
    %cst_47 = arith.constant -0.0659009814 : f32
    %122 = vector.broadcast %cst_47 : f32 to vector<64x128xf32>
    %123 = arith.subf %18, %122 : vector<64x128xf32>
    %cst_48 = arith.constant 1.000000e+00 : f32
    %124 = vector.broadcast %cst_48 : f32 to vector<64x128xf32>
    %125 = arith.mulf %123, %124 : vector<64x128xf32>
    %cst_49 = arith.constant -0.529106379 : f32
    %126 = vector.broadcast %cst_49 : f32 to vector<64x128xf32>
    %127 = arith.subf %11, %126 : vector<64x128xf32>
    %cst_50 = arith.constant 1.000000e+00 : f32
    %128 = vector.broadcast %cst_50 : f32 to vector<64x128xf32>
    %129 = arith.mulf %127, %128 : vector<64x128xf32>
    %130 = arith.mulf %125, %125 : vector<64x128xf32>
    %131 = arith.mulf %129, %129 : vector<64x128xf32>
    %132 = arith.addf %130, %131 : vector<64x128xf32>
    %cst_51 = arith.constant 255.208405 : f32
    %133 = vector.broadcast %cst_51 : f32 to vector<64x128xf32>
    %134 = arith.mulf %132, %133 : vector<64x128xf32>
    %cst_52 = arith.constant 1.000000e+00 : f32
    %135 = vector.broadcast %cst_52 : f32 to vector<64x128xf32>
    %136 = arith.subf %135, %134 : vector<64x128xf32>
    %cst_53 = arith.constant 0.000000e+00 : f32
    %137 = vector.broadcast %cst_53 : f32 to vector<64x128xf32>
    %138 = arith.maximumf %137, %136 : vector<64x128xf32>
    %cst_54 = arith.constant 0.966807603 : f32
    %139 = vector.broadcast %cst_54 : f32 to vector<64x128xf32>
    %140 = arith.mulf %138, %139 : vector<64x128xf32>
    %141 = arith.maximumf %121, %140 : vector<64x128xf32>
    %cst_55 = arith.constant -0.385251492 : f32
    %142 = vector.broadcast %cst_55 : f32 to vector<64x128xf32>
    %143 = arith.subf %18, %142 : vector<64x128xf32>
    %cst_56 = arith.constant 6.696930e-01 : f32
    %144 = vector.broadcast %cst_56 : f32 to vector<64x128xf32>
    %145 = arith.mulf %143, %144 : vector<64x128xf32>
    %cst_57 = arith.constant -0.106668718 : f32
    %146 = vector.broadcast %cst_57 : f32 to vector<64x128xf32>
    %147 = arith.subf %11, %146 : vector<64x128xf32>
    %cst_58 = arith.constant 0.727226555 : f32
    %148 = vector.broadcast %cst_58 : f32 to vector<64x128xf32>
    %149 = arith.mulf %147, %148 : vector<64x128xf32>
    %150 = arith.mulf %145, %145 : vector<64x128xf32>
    %151 = arith.mulf %149, %149 : vector<64x128xf32>
    %152 = arith.addf %150, %151 : vector<64x128xf32>
    %153 = math.sqrt %152 : vector<64x128xf32>
    %cst_59 = arith.constant 0.000000e+00 : f32
    %154 = vector.broadcast %cst_59 : f32 to vector<64x128xf32>
    %155 = arith.subf %154, %153 : vector<64x128xf32>
    %cst_60 = arith.constant 6.42199516 : f32
    %156 = vector.broadcast %cst_60 : f32 to vector<64x128xf32>
    %157 = arith.mulf %155, %156 : vector<64x128xf32>
    %cst_61 = arith.constant -0.228514552 : f32
    %158 = vector.broadcast %cst_61 : f32 to vector<64x128xf32>
    %159 = arith.addf %157, %158 : vector<64x128xf32>
    %160 = math.exp %159 : vector<64x128xf32>
    %161 = arith.maximumf %141, %160 : vector<64x128xf32>
    %cst_62 = arith.constant 0.878977179 : f32
    %162 = vector.broadcast %cst_62 : f32 to vector<64x128xf32>
    %163 = arith.mulf %161, %162 : vector<64x128xf32>
    %164 = arith.maximumf %20, %163 : vector<64x128xf32>
    %cst_63 = arith.constant 0.274886429 : f32
    %165 = arith.mulf %19, %cst_63 : f32
    %166 = vector.broadcast %165 : f32 to vector<64x128xf32>
    %167 = arith.mulf %164, %166 : vector<64x128xf32>
    %cst_64 = arith.constant 0.000000e+00 : f32
    %168 = vector.broadcast %cst_64 : f32 to vector<64x128xf32>
    %cst_65 = arith.constant 0.000000e+00 : f32
    %169 = vector.broadcast %cst_65 : f32 to vector<64x128xf32>
    %cst_66 = arith.constant 0.000000e+00 : f32
    %170 = vector.broadcast %cst_66 : f32 to vector<64x128xf32>
    %cst_67 = arith.constant 0.000000e+00 : f32
    %171 = vector.broadcast %cst_67 : f32 to vector<64x128xf32>
    %cst_68 = arith.constant 2.000000e-01 : f32
    %172 = vector.broadcast %cst_68 : f32 to vector<64x128xf32>
    %173 = arith.cmpf ogt, %167, %172 : vector<64x128xf32>
    %cst_69 = arith.constant 2.500000e-01 : f32
    %174 = vector.broadcast %cst_69 : f32 to vector<64x128xf32>
    %175 = arith.cmpf ole, %167, %174 : vector<64x128xf32>
    %176 = arith.andi %173, %175 : vector<64x128xi1>
    %cst_70 = arith.constant 0.0687216073 : f32
    %177 = vector.broadcast %cst_70 : f32 to vector<64x128xf32>
    %178 = arith.select %176, %177, %168 : vector<64x128xi1>, vector<64x128xf32>
    %cst_71 = arith.constant 6.500000e-01 : f32
    %179 = vector.broadcast %cst_71 : f32 to vector<64x128xf32>
    %180 = arith.select %176, %179, %169 : vector<64x128xi1>, vector<64x128xf32>
    %cst_72 = arith.constant 4.000000e-01 : f32
    %181 = vector.broadcast %cst_72 : f32 to vector<64x128xf32>
    %182 = arith.select %176, %181, %170 : vector<64x128xi1>, vector<64x128xf32>
    %cst_73 = arith.constant 2.500000e-01 : f32
    %183 = vector.broadcast %cst_73 : f32 to vector<64x128xf32>
    %184 = arith.select %176, %183, %171 : vector<64x128xi1>, vector<64x128xf32>
    %cst_74 = arith.constant 1.000000e+00 : f32
    %185 = vector.broadcast %cst_74 : f32 to vector<64x128xf32>
    %186 = arith.subf %185, %178 : vector<64x128xf32>
    %c0 = arith.constant 0 : index
    %c0_75 = arith.constant 0 : index
    %c0_76 = arith.constant 0 : index
    %187 = vector.load %arg2[%c0, %c0_75, %c0_76] : memref<3x64x128xf32, #tpu.memory_space<vmem>>, vector<1x64x128xf32>
    %188 = vector.shape_cast %187 : vector<1x64x128xf32> to vector<64x128xf32>
    %189 = arith.mulf %188, %186 : vector<64x128xf32>
    %190 = arith.mulf %180, %178 : vector<64x128xf32>
    %191 = arith.addf %189, %190 : vector<64x128xf32>
    %192 = arith.select %176, %191, %188 : vector<64x128xi1>, vector<64x128xf32>
    %cst_77 = arith.constant 0.000000e+00 : f32
    %cst_78 = arith.constant 1.000000e+00 : f32
    %193 = vector.broadcast %cst_77 : f32 to vector<64x128xf32>
    %194 = arith.maximumf %193, %192 : vector<64x128xf32>
    %195 = vector.broadcast %cst_78 : f32 to vector<64x128xf32>
    %196 = arith.minimumf %195, %194 : vector<64x128xf32>
    %c0_79 = arith.constant 0 : index
    %c0_80 = arith.constant 0 : index
    %c0_81 = arith.constant 0 : index
    %197 = vector.load %arg3[%c0_79, %c0_80, %c0_81] : memref<3x64x128xf32, #tpu.memory_space<vmem>>, vector<1x64x128xf32>
    %198 = vector.shape_cast %197 : vector<1x64x128xf32> to vector<64x128xf32>
    %199 = vector.shape_cast %196 : vector<64x128xf32> to vector<1x64x128xf32>
    tpu.vector_store %arg3[%c0_79, %c0_80, %c0_81], %199 {strides = array<i32>} : memref<3x64x128xf32, #tpu.memory_space<vmem>>, vector<1x64x128xf32>,
    %c1 = arith.constant 1 : index
    %c0_82 = arith.constant 0 : index
    %c0_83 = arith.constant 0 : index
    %200 = vector.load %arg2[%c1, %c0_82, %c0_83] : memref<3x64x128xf32, #tpu.memory_space<vmem>>, vector<1x64x128xf32>
    %201 = vector.shape_cast %200 : vector<1x64x128xf32> to vector<64x128xf32>
    %202 = arith.mulf %201, %186 : vector<64x128xf32>
    %203 = arith.mulf %182, %178 : vector<64x128xf32>
    %204 = arith.addf %202, %203 : vector<64x128xf32>
    %205 = arith.select %176, %204, %201 : vector<64x128xi1>, vector<64x128xf32>
    %cst_84 = arith.constant 0.000000e+00 : f32
    %cst_85 = arith.constant 1.000000e+00 : f32
    %206 = vector.broadcast %cst_84 : f32 to vector<64x128xf32>
    %207 = arith.maximumf %206, %205 : vector<64x128xf32>
    %208 = vector.broadcast %cst_85 : f32 to vector<64x128xf32>
    %209 = arith.minimumf %208, %207 : vector<64x128xf32>
    %c1_86 = arith.constant 1 : index
    %c0_87 = arith.constant 0 : index
    %c0_88 = arith.constant 0 : index
    %210 = vector.load %arg3[%c1_86, %c0_87, %c0_88] : memref<3x64x128xf32, #tpu.memory_space<vmem>>, vector<1x64x128xf32>
    %211 = vector.shape_cast %210 : vector<1x64x128xf32> to vector<64x128xf32>
    %212 = vector.shape_cast %209 : vector<64x128xf32> to vector<1x64x128xf32>
    tpu.vector_store %arg3[%c1_86, %c0_87, %c0_88], %212 {strides = array<i32>} : memref<3x64x128xf32, #tpu.memory_space<vmem>>, vector<1x64x128xf32>,
    %c2_89 = arith.constant 2 : index
    %c0_90 = arith.constant 0 : index
    %c0_91 = arith.constant 0 : index
    %213 = vector.load %arg2[%c2_89, %c0_90, %c0_91] : memref<3x64x128xf32, #tpu.memory_space<vmem>>, vector<1x64x128xf32>
    %214 = vector.shape_cast %213 : vector<1x64x128xf32> to vector<64x128xf32>
    %215 = arith.mulf %214, %186 : vector<64x128xf32>
    %216 = arith.mulf %184, %178 : vector<64x128xf32>
    %217 = arith.addf %215, %216 : vector<64x128xf32>
    %218 = arith.select %176, %217, %214 : vector<64x128xi1>, vector<64x128xf32>
    %cst_92 = arith.constant 0.000000e+00 : f32
    %cst_93 = arith.constant 1.000000e+00 : f32
    %219 = vector.broadcast %cst_92 : f32 to vector<64x128xf32>
    %220 = arith.maximumf %219, %218 : vector<64x128xf32>
    %221 = vector.broadcast %cst_93 : f32 to vector<64x128xf32>
    %222 = arith.minimumf %221, %220 : vector<64x128xf32>
    %c2_94 = arith.constant 2 : index
    %c0_95 = arith.constant 0 : index
    %c0_96 = arith.constant 0 : index
    %223 = vector.load %arg3[%c2_94, %c0_95, %c0_96] : memref<3x64x128xf32, #tpu.memory_space<vmem>>, vector<1x64x128xf32>
    %224 = vector.shape_cast %223 : vector<1x64x128xf32> to vector<64x128xf32>
    %225 = vector.shape_cast %222 : vector<64x128xf32> to vector<1x64x128xf32>
    tpu.vector_store %arg3[%c2_94, %c0_95, %c0_96], %225 {strides = array<i32>} : memref<3x64x128xf32, #tpu.memory_space<vmem>>, vector<1x64x128xf32>,
    return
  }
  func.func @transform_0(%arg0: i32) -> i32 {
    %c0_i32 = arith.constant 0 : i32
    %c0_i32_0 = arith.constant 0 : i32
    return %c0_i32 : i32
  }
  func.func @transform_1(%arg0: i32) -> (i32, i32, i32) {
    %c0_i32 = arith.constant 0 : i32
    %c0_i32_0 = arith.constant 0 : i32
    %c0_i32_1 = arith.constant 0 : i32
    return %c0_i32, %arg0, %c0_i32_0 : i32, i32, i32
  }
  func.func @transform_2(%arg0: i32) -> (i32, i32, i32) {
    %c0_i32 = arith.constant 0 : i32
    %c0_i32_0 = arith.constant 0 : i32
    %c0_i32_1 = arith.constant 0 : i32
    return %c0_i32, %arg0, %c0_i32_0 : i32, i32, i32
  }
}

</mosaic_0001>

<bundles_post_ra>
// kernel: tpu_custom_call.1
= control target key start
LH: loop header
LB: loop body
LE: loop exit
PB: predicated region body
PF: predicated region fallthrough
CT: control target
= control target key end

     0   :  { %7 = vsyncpa [#allocation5], 0  ;;  %s1752_s0 = inlined_call_operand.hbm [shape: f32[8], index: 0, kind: input, shape index: {}]   ;;  %s1753_s1 = inlined_call_operand.hbm [shape: f32[3,64,128], index: 1, kind: input, shape index: {}]   ;;  %s1754_s2 = inlined_call_operand.hbm [shape: f32[3,64,128], index: 2, kind: output, shape index: {}]  }
   0x1   :  { %8 = vsyncpa [#allocation3], 0 }
   0x2   :  { %9 = vsyncpa [#allocation4], 0  ;;  %s15_s11 = sshll.u32 %s1752_s0, 4  ;;  %s23_s14 = sshll.u32 %s1753_s1, 4  ;;  %s16_s11 = int_to_ptr.hbm [resolvable:$true] %s15_s11  ;;  %s24_s14 = int_to_ptr.hbm [resolvable:$true] %s23_s14 }
   0x3   :  { %s1186_s15 = smov [#allocation2]   ;;  %s1187_s16 = smov [#allocation6]  }
   0x4   :  { %18 = dma.hbm_to_smem %s16_s11, 16, %s1186_s15, [#allocation5]  }
   0x5   :  { %s25_s17 = sshll.u32 %s1187_s16, 4  ;;  %s1188_s18 = smov 128   ;;  %s26_s17 = int_to_ptr.vmem [resolvable:$true] %s25_s17 }
   0x6   :  { %s1189_s19 = smov 8  }
   0x7   :  { %31 = dma.hbm_to_vmem [thread:$0]  %s24_s14, 3072, %s26_s17, [#allocation3], %s1188_s18, %s1188_s18, %s1189_s19  }
   0x8   :  { %1180 = dma.done.wait [#allocation5], 16  }
   0x9   :  { %1181 = vsyncadd [#allocation5], 4294967280 }
   0xa   :  { %1182 = dma.done.wait [#allocation3], 3072  }
   0xb   :  { %1183 = vsyncadd [#allocation3], 4294964224 }
   0xc   :  { %40 = sfence }
   0xd   :  { %v1190_v0 = vmov 63.0   ;;  %v1191_v1 = vmov 95.0   ;;  %v41_v2 = vlaneseq  ;;  %s1291_s0 = sld [smem:[#allocation2 + $0x2]]  ;;  %s1193_s20 = smov [#allocation7]  }
   0xe   :  { %1084 = vrcp.f32 %v1190_v0  ;;  %s996_s21 = sshll.u32 %s1193_s20, 4  ;;  %s998_s24 = sshll.u32 %s1754_s2, 4  ;;  %s997_s21 = int_to_ptr.vmem [resolvable:$true] %s996_s21  ;;  %s999_s24 = int_to_ptr.hbm [resolvable:$true] %s998_s24 }
   0xf   :  { %1086 = vrcp.f32 %v1191_v1  ;;  %v61_v3 = vand.u32 127, %v41_v2  ;;  %v1218_v5 = vshrl.u32 %v41_v2, 7 }
  0x11   :  { %v62_v8 = vcvt.s32.f32 %v1218_v5  ;;  %v101_v11 = vcvt.s32.f32 %v61_v3  ;;  %v43_v20 = vadd.s32 8, %v1218_v5  ;;  %v44_v50 = vadd.s32 16, %v1218_v5 }
  0x13   :  { %v70_v14 = vmul.f32 2.0, %v62_v8  ;;  %v102_v17 = vmul.f32 2.0, %v101_v11  ;;  %v63_v26 = vcvt.s32.f32 %v43_v20  ;;  %v64_v63 = vcvt.s32.f32 %v44_v50  ;;  %s722_s1 = smul.f32 0.27488643, %s1291_s0 }
  0x14   :  { %v1085_v4 = vpop.eup %1084 }
  0x15   :  { %v1087_v6 = vpop.eup %1086  ;;  %v79_v7 = vmul.f32 63.0, %v1085_v4  ;;  %vm83_vm0 = vweird.f32 %v1085_v4  ;;  %v71_v39 = vmul.f32 2.0, %v63_v26 }
  0x16   :  { %v104_v9 = vmul.f32 95.0, %v1087_v6  ;;  %vm108_vm1 = vweird.f32 %v1087_v6 }
  0x17   :  { %v80_v10 = vsub.f32 1.0, %v79_v7 }
  0x18   :  { %v105_v12 = vsub.f32 1.0, %v104_v9 }
  0x19   :  { %v81_v13 = vmul.f32 %v1085_v4, %v80_v10 }
  0x1a   :  { %v106_v15 = vmul.f32 %v1087_v6, %v105_v12  ;;  %v72_v12 = vmul.f32 2.0, %v64_v63 }
  0x1b   :  { %v82_v16 = vadd.f32 %v1085_v4, %v81_v13 }
  0x1c   :  { %v107_v18 = vadd.f32 %v1087_v6, %v106_v15 }
  0x1d   :  { %v1221_v19 = vsel %vm83_vm0, %v1085_v4, %v82_v16 }
  0x1e   :  { %v85_v21 = vmul.f32 %v1221_v19, %v70_v14  ;;  %v109_v22 = vsel %vm108_vm1, %v1087_v6, %v107_v18  ;;  %v86_v54 = vmul.f32 %v1221_v19, %v71_v39 }
  0x1f   :  { %v110_v23 = vmul.f32 %v109_v22, %v102_v17 }
  0x20   :  { %v93_v24 = vadd.f32 -1.0, %v85_v21  ;;  %v94_v7 = vadd.f32 -1.0, %v86_v54 }
  0x21   :  { %v111_v25 = vadd.f32 -1.0, %v110_v23 }
  0x22   :  { %v1014_v27 = vadd.f32 -0.08616902, %v93_v24  ;;  %v1023_v28 = vadd.f32 -0.34765202, %v93_v24  ;;  %v1032_v29 = vadd.f32 -0.23426315, %v93_v24 }
  0x23   :  { %v1013_v30 = vadd.f32 0.9720135, %v111_v25  ;;  %v1022_v31 = vadd.f32 -0.29028514, %v111_v25  ;;  %v1031_v32 = vadd.f32 -0.32776123, %v111_v25 }
  0x24   :  { %v123_v33 = vmul.f32 %v1014_v27, %v1014_v27  ;;  %v189_v34 = vmul.f32 0.7695844, %v1023_v28  ;;  %v264_v35 = vmul.f32 1.2045331, %v1032_v29  ;;  %v1040_v42 = vadd.f32 0.41922164, %v111_v25 }
  0x25   :  { %v1225_v36 = vmul.f32 %v1013_v30, %v1013_v30  ;;  %v180_v37 = vmul.f32 1.6811504, %v1022_v31  ;;  %v255_v38 = vmul.f32 0.74048084, %v1031_v32  ;;  %v1041_v43 = vadd.f32 0.14360133, %v93_v24 }
  0x26   :  { %v198_v40 = vmul.f32 %v189_v34, %v189_v34  ;;  %v273_v41 = vmul.f32 %v264_v35, %v264_v35  ;;  %v1049_v47 = vadd.f32 -0.19590907, %v111_v25  ;;  %v1050_v48 = vadd.f32 0.30831257, %v93_v24 }
  0x27   :  { %v131_v44 = vadd.f32 %v123_v33, %v1225_v36  ;;  %v1228_v45 = vmul.f32 %v180_v37, %v180_v37  ;;  %v1230_v46 = vmul.f32 %v255_v38, %v255_v38  ;;  %v1058_v49 = vadd.f32 0.06590098, %v111_v25 }
  0x28   :  { %v1059_v53 = vadd.f32 0.5291064, %v93_v24  ;;  %v1236_v56 = vmul.f32 %v1040_v42, %v1040_v42  ;;  %v339_v57 = vmul.f32 %v1041_v43, %v1041_v43  ;;  %v1067_v58 = vadd.f32 0.3852515, %v111_v25 }
  0x29   :  { %v139_v51 = vmul.f32 21.43931, %v131_v44  ;;  %v206_v52 = vadd.f32 %v198_v40, %v1228_v45  ;;  %v281_v55 = vadd.f32 %v273_v41, %v1230_v46  ;;  %v1238_v59 = vmul.f32 %v1049_v47, %v1049_v47 }
  0x2a   :  { %v405_v60 = vmul.f32 %v1050_v48, %v1050_v48  ;;  %v1240_v61 = vmul.f32 %v1058_v49, %v1058_v49  ;;  %v528_v62 = vmul.f32 0.669693, %v1067_v58  ;;  %v471_v2 = vmul.f32 %v1059_v53, %v1059_v53 }
  0x2b   :  { %v147_v0 = vsub.f32 1.0, %v139_v51  ;;  %v214_v1 = vmul.f32 16.33122, %v206_v52  ;;  %v1068_v3 = vadd.f32 0.10666872, %v93_v24  ;;  %v347_v6 = vadd.f32 %v339_v57, %v1236_v56 }
  0x2c   :  { %v289_v4 = vmul.f32 38.121483, %v281_v55  ;;  %v413_v8 = vadd.f32 %v405_v60, %v1238_v59  ;;  %v1244_v10 = vmul.f32 %v528_v62, %v528_v62  ;;  %v1015_v11 = vadd.f32 -0.08616902, %v94_v7 }
  0x2d   :  { %v537_v9 = vmul.f32 0.72722656, %v1068_v3  ;;  %v155_v13 = vmax.f32 %v147_v0, 0.0  ;;  %v222_v14 = vsub.f32 1.0, %v214_v1  ;;  %v479_v15 = vadd.f32 %v471_v2, %v1240_v61 }
  0x2e   :  { %v297_v17 = vsub.f32 1.0, %v289_v4  ;;  %v355_v18 = vmul.f32 42.017765, %v347_v6  ;;  %v124_v20 = vmul.f32 %v1015_v11, %v1015_v11  ;;  %v421_v21 = vmul.f32 23.335613, %v413_v8 }
  0x2f   :  { %v546_v16 = vmul.f32 %v537_v9, %v537_v9  ;;  %v1024_v23 = vadd.f32 -0.34765202, %v94_v7  ;;  %v1033_v24 = vadd.f32 -0.23426315, %v94_v7  ;;  %v1042_v26 = vadd.f32 0.14360133, %v94_v7 }
  0x30   :  { %v132_v25 = vadd.f32 %v124_v20, %v1225_v36  ;;  %v87_v27 = vmul.f32 %v1221_v19, %v72_v12  ;;  %v163_v28 = vmul.f32 0.98712, %v155_v13  ;;  %v230_v29 = vmax.f32 %v222_v14, 0.0 }
  0x31   :  { %v1248_v22 = vadd.f32 %v546_v16, %v1244_v10  ;;  %v487_v30 = vmul.f32 255.2084, %v479_v15  ;;  %v305_v31 = vmax.f32 %v297_v17, 0.0  ;;  %v363_v32 = vsub.f32 1.0, %v355_v18 }
  0x32   :  { %v140_v33 = vmul.f32 21.43931, %v132_v25  ;;  %v190_v34 = vmul.f32 0.7695844, %v1024_v23  ;;  %v429_v35 = vsub.f32 1.0, %v421_v21  ;;  %v340_v38 = vmul.f32 %v1042_v26, %v1042_v26 }
  0x33   :  { %1088 = vrsqrt.f32 %v1248_v22  ;;  %v265_v37 = vmul.f32 1.2045331, %v1033_v24  ;;  %v1051_v39 = vadd.f32 0.30831257, %v94_v7  ;;  %v1060_v42 = vadd.f32 0.5291064, %v94_v7 }
  0x34   :  { %v148_v40 = vsub.f32 1.0, %v140_v33  ;;  %v199_v41 = vmul.f32 %v190_v34, %v190_v34  ;;  %v1069_v43 = vadd.f32 0.10666872, %v94_v7  ;;  %v171_v44 = vmax.f32 %v163_v28, 0.0 }
  0x35   :  { %v238_v47 = vmul.f32 0.8130255, %v230_v29  ;;  %v274_v48 = vmul.f32 %v265_v37, %v265_v37  ;;  %v406_v49 = vmul.f32 %v1051_v39, %v1051_v39  ;;  %v371_v50 = vmax.f32 %v363_v32, 0.0 }
  0x36   :  { %v207_v51 = vadd.f32 %v199_v41, %v1228_v45  ;;  %v1254_v52 = vadd.f32 -1.0, %v87_v27  ;;  %v495_v54 = vsub.f32 1.0, %v487_v30  ;;  %v348_v57 = vadd.f32 %v340_v38, %v1236_v56 }
  0x37   :  { %v282_v55 = vadd.f32 %v274_v48, %v1230_v46  ;;  %v538_v58 = vmul.f32 0.72722656, %v1069_v43  ;;  %v156_v62 = vmax.f32 %v148_v40, 0.0  ;;  %v472_v0 = vmul.f32 %v1060_v42, %v1060_v42 }
  0x38   :  { %v215_v63 = vmul.f32 16.33122, %v207_v51  ;;  %v246_v1 = vmax.f32 %v171_v44, %v238_v47  ;;  %v313_v2 = vmul.f32 0.74151653, %v305_v31  ;;  %v437_v3 = vmax.f32 %v429_v35, 0.0 }
  0x39   :  { %v1089_v53 = vpop.eup %1088  ;;  %v414_v4 = vadd.f32 %v406_v49, %v1238_v59  ;;  %v379_v6 = vmul.f32 0.62491184, %v371_v50  ;;  %v290_v8 = vmul.f32 38.121483, %v282_v55  ;;  %v1261_v9 = vadd.s32 24, %v1218_v5 }
  0x3a   :  { %v563_v60 = vmul.f32 %v1089_v53, %v1248_v22  ;;  %v503_v11 = vmax.f32 %v495_v54, 0.0  ;;  %v223_v12 = vsub.f32 1.0, %v215_v63  ;;  %v356_v13 = vmul.f32 42.017765, %v348_v57 }
  0x3b   :  { %v547_v14 = vmul.f32 %v538_v58, %v538_v58  ;;  %v164_v16 = vmul.f32 0.98712, %v156_v62  ;;  %v480_v17 = vadd.f32 %v472_v0, %v1240_v61  ;;  %v1016_v18 = vadd.f32 -0.08616902, %v1254_v52 }
  0x3c   :  { %v564_v7 = vmul.f32 %v1089_v53, %v563_v60  ;;  %v321_v20 = vmax.f32 %v246_v1, %v313_v2  ;;  %v1265_v21 = vmul.f32 0.85010636, %v437_v3  ;;  %v422_v23 = vmul.f32 23.335613, %v414_v4 }
  0x3d   :  { %v1268_v24 = vadd.f32 %v547_v14, %v1244_v10  ;;  %vm569_vm2 = vcmp.eq.f32.partialorder %v1248_v22, inf  ;;  %v298_v26 = vsub.f32 1.0, %v290_v8  ;;  %v125_v27 = vmul.f32 %v1016_v18, %v1016_v18 }
  0x3e   :  { %v565_v15 = vmul.f32 0.5, %v564_v7  ;;  %vm571_vm3 = vcmp.eq.f32.partialorder %v1248_v22, 0.0  ;;  %v572_v28 = vand.u32 2147483648, %v1248_v22  ;;  %v231_v29 = vmax.f32 %v223_v12, 0.0 }
  0x3f   :  { %1090 = vrsqrt.f32 %v1268_v24  ;;  %v172_v31 = vmax.f32 %v164_v16, 0.0  ;;  %v364_v32 = vsub.f32 1.0, %v356_v13  ;;  %v488_v33 = vmul.f32 255.2084, %v480_v17 }
  0x40   :  { %v566_v25 = vsub.f32 1.5, %v565_v15  ;;  %v430_v34 = vsub.f32 1.0, %v422_v23  ;;  %v133_v35 = vadd.f32 %v125_v27, %v1225_v36  ;;  %v1025_v37 = vadd.f32 -0.34765202, %v1254_v52 }
  0x41   :  { %v1034_v38 = vadd.f32 -0.23426315, %v1254_v52  ;;  %v306_v40 = vmax.f32 %v298_v26, 0.0  ;;  %v1043_v41 = vadd.f32 0.14360133, %v1254_v52  ;;  %v387_v43 = vmax.f32 %v321_v20, %v379_v6 }
  0x42   :  { %v567_v30 = vmul.f32 %v1089_v53, %v566_v25  ;;  %v1052_v42 = vadd.f32 0.30831257, %v1254_v52  ;;  %v239_v44 = vmul.f32 0.8130255, %v231_v29  ;;  %v191_v47 = vmul.f32 0.7695844, %v1025_v37 }
  0x43   :  { %v266_v48 = vmul.f32 1.2045331, %v1034_v38  ;;  %v372_v50 = vmax.f32 %v364_v32, 0.0  ;;  %v141_v51 = vmul.f32 21.43931, %v133_v35  ;;  %v341_v53 = vmul.f32 %v1043_v41, %v1043_v41 }
  0x44   :  { %v568_v39 = vmul.f32 %v567_v30, %v1248_v22  ;;  %v496_v57 = vsub.f32 1.0, %v488_v33  ;;  %v200_v58 = vmul.f32 %v191_v47, %v191_v47  ;;  %v438_v63 = vmax.f32 %v430_v34, 0.0 }
  0x45   :  { %v1091_v54 = vpop.eup %1090  ;;  %v275_v60 = vmul.f32 %v266_v48, %v266_v48  ;;  %v407_v1 = vmul.f32 %v1052_v42, %v1052_v42  ;;  %v247_v2 = vmax.f32 %v172_v31, %v239_v44  ;;  %v314_v3 = vmul.f32 0.74151653, %v306_v40 }
  0x46   :  { %v570_v49 = vsel %vm569_vm2, %v1248_v22, %v568_v39  ;;  %v575_v0 = vmul.f32 %v1091_v54, %v1268_v24  ;;  %v208_v4 = vadd.f32 %v200_v58, %v1228_v45  ;;  %v149_v12 = vsub.f32 1.0, %v141_v51 }
  0x47   :  { %v573_v55 = vsel %vm571_vm3, %v572_v28, %v570_v49  ;;  %v283_v6 = vadd.f32 %v275_v60, %v1230_v46  ;;  %v349_v22 = vadd.f32 %v341_v53, %v1236_v56  ;;  %v453_v13 = vmax.f32 %v387_v43, %v1265_v21 }
  0x48   :  { %v658_v62 = vsub.f32 0.0, %v573_v55  ;;  %v576_v8 = vmul.f32 %v1091_v54, %v575_v0  ;;  %v511_v14 = vmul.f32 0.9668076, %v503_v11  ;;  %v380_v15 = vmul.f32 0.62491184, %v372_v50 }
  0x49   :  { %v504_v16 = vmax.f32 %v496_v57, 0.0  ;;  %v216_v20 = vmul.f32 16.33122, %v208_v4  ;;  %v415_v23 = vadd.f32 %v407_v1, %v1238_v59  ;;  %v322_v25 = vmax.f32 %v247_v2, %v314_v3 }
  0x4a   :  { %v666_v7 = vmul.f32 6.421995, %v658_v62  ;;  %v577_v18 = vmul.f32 0.5, %v576_v8  ;;  %v446_v26 = vmul.f32 0.85010636, %v438_v63  ;;  %v65_v28 = vcvt.s32.f32 %v1261_v9 }
  0x4b   :  { %v291_v27 = vmul.f32 38.121483, %v283_v6  ;;  %v157_v31 = vmax.f32 %v149_v12, 0.0  ;;  %v357_v32 = vmul.f32 42.017765, %v349_v22  ;;  %vm581_vm4 = vcmp.eq.f32.partialorder %v1268_v24, inf }
  0x4c   :  { %v674_v17 = vadd.f32 -0.22851455, %v666_v7  ;;  %v578_v30 = vsub.f32 1.5, %v577_v18  ;;  %vm583_vm5 = vcmp.eq.f32.partialorder %v1268_v24, 0.0  ;;  %v1061_v11 = vadd.f32 0.5291064, %v1254_v52 }
  0x4d   :  { %v1070_v21 = vadd.f32 0.10666872, %v1254_v52  ;;  %v224_v34 = vsub.f32 1.0, %v216_v20  ;;  %v423_v35 = vmul.f32 23.335613, %v415_v23  ;;  %v388_v37 = vmax.f32 %v322_v25, %v380_v15 }
  0x4e   :  { %v682_v29 = vmul.f32 1.442695, %v674_v17  ;;  %v579_v33 = vmul.f32 %v1091_v54, %v578_v30  ;;  %v584_v9 = vand.u32 2147483648, %v1268_v24  ;;  %v299_v38 = vsub.f32 1.0, %v291_v27 }
  0x4f   :  { %v539_v39 = vmul.f32 0.72722656, %v1070_v21  ;;  %v165_v41 = vmul.f32 0.98712, %v157_v31  ;;  %v365_v42 = vsub.f32 1.0, %v357_v32  ;;  %v73_v43 = vmul.f32 2.0, %v65_v28 }
  0x50   :  { %1092 = vpow2.f32 %v682_v29  ;;  %v580_v40 = vmul.f32 %v579_v33, %v1268_v24  ;;  %v519_v44 = vmax.f32 %v453_v13, %v511_v14  ;;  %v473_v47 = vmul.f32 %v1061_v11, %v1061_v11 }
  0x51   :  { %v548_v48 = vmul.f32 %v539_v39, %v539_v39  ;;  %v232_v49 = vmax.f32 %v224_v34, 0.0  ;;  %v431_v50 = vsub.f32 1.0, %v423_v35  ;;  %v88_v51 = vmul.f32 %v1221_v19, %v73_v43 }
  0x52   :  { %v582_v52 = vsel %vm581_vm4, %v1268_v24, %v580_v40  ;;  %v512_v53 = vmul.f32 0.9668076, %v504_v16  ;;  %v307_v55 = vmax.f32 %v299_v38, 0.0  ;;  %v454_v60 = vmax.f32 %v388_v37, %v446_v26 }
  0x53   :  { %v585_v54 = vsel %vm583_vm5, %v584_v9, %v582_v52  ;;  %v1308_v57 = vadd.f32 %v548_v48, %v1244_v10  ;;  %v173_v63 = vmax.f32 %v165_v41, 0.0  ;;  %v373_v0 = vmax.f32 %v365_v42, 0.0  ;;  %v796_v48 = vld [vmem:[#allocation6] sm:$0xff] }
  0x54   :  { %v659_v62 = vsub.f32 0.0, %v585_v54  ;;  %v481_v2 = vadd.f32 %v473_v47, %v1240_v61  ;;  %v1312_v3 = vadd.f32 -1.0, %v88_v51  ;;  %v240_v6 = vmul.f32 0.8130255, %v232_v49 }
  0x55   :  { %1094 = vrsqrt.f32 %v1308_v57  ;;  %v439_v24 = vmax.f32 %v431_v50, 0.0  ;;  %v46_v7 = vadd.s32 32, %v1218_v5  ;;  %v1315_v12 = vstv %s722_s1 }
  0x56   :  { %v1093_v58 = vpop.eup %1092  ;;  %v667_v4 = vmul.f32 6.421995, %v659_v62  ;;  %v1317_v22 = vmul.f32 0.74151653, %v307_v55  ;;  %v1017_v13 = vadd.f32 -0.08616902, %v1312_v3  ;;  %v520_v14 = vmax.f32 %v454_v60, %v512_v53 }
  0x57   :  { %v698_v1 = vmax.f32 %v519_v44, %v1093_v58  ;;  %v1026_v16 = vadd.f32 -0.34765202, %v1312_v3  ;;  %v1035_v17 = vadd.f32 -0.23426315, %v1312_v3  ;;  %v489_v20 = vmul.f32 255.2084, %v481_v2 }
  0x58   :  { %v675_v15 = vadd.f32 -0.22851455, %v667_v4  ;;  %v126_v23 = vmul.f32 %v1017_v13, %v1017_v13  ;;  %v1044_v25 = vadd.f32 0.14360133, %v1312_v3  ;;  %v66_v29 = vcvt.s32.f32 %v46_v7 }
  0x59   :  { %v706_v8 = vmul.f32 0.8789772, %v698_v1  ;;  %v192_v27 = vmul.f32 0.7695844, %v1026_v16  ;;  %v267_v28 = vmul.f32 1.2045331, %v1035_v17  ;;  %v1327_v37 = vmax.f32 %v173_v63, %v240_v6 }
  0x5a   :  { %v684_v26 = vmul.f32 1.442695, %v675_v15  ;;  %v134_v32 = vadd.f32 %v126_v23, %v1225_v36  ;;  %v342_v11 = vmul.f32 %v1044_v25, %v1044_v25  ;;  %v1053_v21 = vadd.f32 0.30831257, %v1312_v3 }
  0x5b   :  { %v714_v18 = vmax.f32 %v706_v8, 0.0  ;;  %v1095_v30 = vpop.eup %1094  ;;  %v201_v34 = vmul.f32 %v192_v27, %v192_v27  ;;  %v276_v35 = vmul.f32 %v267_v28, %v267_v28  ;;  %v74_v42 = vmul.f32 2.0, %v66_v29 }
  0x5c   :  { %1096 = vpow2.f32 %v684_v26  ;;  %v587_v33 = vmul.f32 %v1095_v30, %v1308_v57  ;;  %v142_v9 = vmul.f32 21.43931, %v134_v32  ;;  %v1192_v43 = vmov 0.0  }
  0x5d   :  { %v724_v31 = vmul.f32 %v1315_v12, %v714_v18  ;;  %v209_v40 = vadd.f32 %v201_v34, %v1228_v45  ;;  %v284_v41 = vadd.f32 %v276_v35, %v1230_v46  ;;  %v350_v49 = vadd.f32 %v342_v11, %v1236_v56 }
  0x5e   :  { %v588_v39 = vmul.f32 %v1095_v30, %v587_v33  ;;  %v150_v52 = vsub.f32 1.0, %v142_v9  ;;  %v323_v55 = vmax.f32 %v1327_v37, %v1317_v22  ;;  %v381_v58 = vmul.f32 0.62491184, %v373_v0 }
  0x5f   :  { %vm732_vm6 = vcmp.gt.f32.partialorder %v724_v31, 0.2  ;;  %vm740_vm7 = vcmp.le.f32.partialorder %v724_v31, 0.25  ;;  %v217_v54 = vmul.f32 16.33122, %v209_v40  ;;  %v408_v62 = vmul.f32 %v1053_v21, %v1053_v21 }
  0x60   :  { %vm1329_vm8 = vmand %vm732_vm6, %vm740_vm7  ;;  %v589_v53 = vmul.f32 0.5, %v588_v39  ;;  %v1350_v60 = vmul.f32 0.85010636, %v439_v24  ;;  %v158_v4 = vmax.f32 %v150_v52, 0.0  ;;  %v292_v6 = vmul.f32 38.121483, %v284_v41 }
  0x61   :  { %v1338_v44 = vsel %vm1329_vm8, 0.06872161, %v1192_v43  ;;  %v764_v47 = vsel %vm1329_vm8, 0.65, %v1192_v43  ;;  %v497_v8 = vsub.f32 1.0, %v489_v20  ;;  %vm593_vm9 = vcmp.eq.f32.partialorder %v1308_v57, inf }
  0x62   :  { %v1345_v50 = vsub.f32 1.0, %v1338_v44  ;;  %v812_v51 = vmul.f32 %v764_v47, %v1338_v44  ;;  %v1097_v63 = vpop.eup %1096  ;;  %v590_v2 = vsub.f32 1.5, %v589_v53  ;;  %v89_v13 = vmul.f32 %v1221_v19, %v74_v42  ;;  %v797_v41 = vld [vmem:[#allocation6 + $0x8] sm:$0xff] }
  0x63   :  { %v699_v7 = vmax.f32 %v520_v14, %v1097_v63  ;;  %v225_v17 = vsub.f32 1.0, %v217_v54  ;;  %v358_v22 = vmul.f32 42.017765, %v350_v49  ;;  %vm595_vm10 = vcmp.eq.f32.partialorder %v1308_v57, 0.0 }
  0x64   :  { %v804_v1 = vmul.f32 %v796_v48, %v1345_v50  ;;  %v591_v16 = vmul.f32 %v1095_v30, %v590_v2  ;;  %v596_v24 = vand.u32 2147483648, %v1308_v57  ;;  %v416_v18 = vadd.f32 %v408_v62, %v1238_v59 }
  0x65   :  { %v707_v0 = vmul.f32 0.8789772, %v699_v7  ;;  %v166_v20 = vmul.f32 0.98712, %v158_v4  ;;  %v300_v25 = vsub.f32 1.0, %v292_v6  ;;  %v505_v28 = vmax.f32 %v497_v8, 0.0 }
  0x66   :  { %v820_v15 = vadd.f32 %v812_v51, %v804_v1  ;;  %v592_v14 = vmul.f32 %v591_v16, %v1308_v57  ;;  %v1062_v29 = vadd.f32 0.5291064, %v1312_v3  ;;  %v233_v31 = vmax.f32 %v225_v17, 0.0 }
  0x67   :  { %v715_v27 = vmax.f32 %v707_v0, 0.0  ;;  %v366_v32 = vsub.f32 1.0, %v358_v22  ;;  %v1365_v11 = vadd.f32 -1.0, %v89_v13  ;;  %v1071_v35 = vadd.f32 0.10666872, %v1312_v3 }
  0x68   :  { %v828_v23 = vsel %vm1329_vm8, %v820_v15, %v796_v48  ;;  %v594_v30 = vsel %vm593_vm9, %v1308_v57, %v592_v14  ;;  %v174_v9 = vmax.f32 %v166_v20, 0.0  ;;  %v308_v39 = vmax.f32 %v300_v25, 0.0 }
  0x69   :  { %v836_v26 = vmax.f32 %v828_v23, 0.0  ;;  %v725_v33 = vmul.f32 %v1315_v12, %v715_v27  ;;  %v597_v34 = vsel %vm595_vm10, %v596_v24, %v594_v30  ;;  %v424_v40 = vmul.f32 23.335613, %v416_v18 }
  0x6a   :  { %v660_v37 = vsub.f32 0.0, %v597_v34  ;;  %v474_v42 = vmul.f32 %v1062_v29, %v1062_v29  ;;  %v540_v47 = vmul.f32 0.72722656, %v1071_v35  ;;  %v389_v52 = vmax.f32 %v323_v55, %v381_v58 }
  0x6b   :  { %v844_v21 = vmin.f32 %v836_v26, 1.0  ;;  %vm733_vm11 = vcmp.gt.f32.partialorder %v725_v33, 0.2  ;;  %vm741_vm12 = vcmp.le.f32.partialorder %v725_v33, 0.25  ;;  %v241_v57 = vmul.f32 0.8130255, %v233_v31 }
  0x6c   :  { %vm1371_vm13 = vmand %vm733_vm11, %vm741_vm12  ;;  %v668_v49 = vmul.f32 6.421995, %v660_v37  ;;  %v1018_v51 = vadd.f32 -0.08616902, %v1365_v11  ;;  %v549_v54 = vmul.f32 %v540_v47, %v540_v47  ;;  %v1027_v62 = vadd.f32 -0.34765202, %v1365_v11 }
  0x6d   :  { %852 = vst [vmem:[#allocation7] sm:$0xff] %v844_v21  ;;  %v1379_v3 = vsel %vm1371_vm13, 0.06872161, %v1192_v43  ;;  %v765_v53 = vsel %vm1371_vm13, 0.65, %v1192_v43  ;;  %v374_v1 = vmax.f32 %v366_v32, 0.0  ;;  %v482_v4 = vadd.f32 %v474_v42, %v1240_v61 }
  0x6e   :  { %v1386_v63 = vsub.f32 1.0, %v1379_v3  ;;  %v813_v55 = vmul.f32 %v765_v53, %v1379_v3  ;;  %v676_v58 = vadd.f32 -0.22851455, %v668_v49  ;;  %v432_v2 = vsub.f32 1.0, %v424_v40 }
  0x6f   :  { %v1391_v6 = vadd.f32 %v549_v54, %v1244_v10  ;;  %v127_v7 = vmul.f32 %v1018_v51, %v1018_v51  ;;  %v249_v15 = vmax.f32 %v174_v9, %v241_v57  ;;  %v316_v16 = vmul.f32 0.74151653, %v308_v39 }
  0x70   :  { %v805_v8 = vmul.f32 %v797_v41, %v1386_v63  ;;  %v686_v13 = vmul.f32 1.442695, %v676_v58  ;;  %v455_v17 = vmax.f32 %v389_v52, %v1350_v60  ;;  %v513_v22 = vmul.f32 0.9668076, %v505_v28 }
  0x71   :  { %1098 = vrsqrt.f32 %v1391_v6  ;;  %v193_v0 = vmul.f32 0.7695844, %v1027_v62  ;;  %v1036_v18 = vadd.f32 -0.23426315, %v1365_v11  ;;  %v382_v23 = vmul.f32 0.62491184, %v374_v1 }
  0x72   :  { %v821_v24 = vadd.f32 %v813_v55, %v805_v8  ;;  %1100 = vpow2.f32 %v686_v13  ;;  %v490_v14 = vmul.f32 255.2084, %v482_v4  ;;  %v135_v20 = vadd.f32 %v127_v7, %v1225_v36 }
  0x73   :  { %v324_v26 = vmax.f32 %v249_v15, %v316_v16  ;;  %v440_v27 = vmax.f32 %v432_v2, 0.0  ;;  %v1045_v29 = vadd.f32 0.14360133, %v1365_v11  ;;  %v521_v28 = vmax.f32 %v455_v17, %v513_v22 }
  0x74   :  { %v829_v25 = vsel %vm1371_vm13, %v821_v24, %v797_v41  ;;  %v202_v30 = vmul.f32 %v193_v0, %v193_v0  ;;  %v268_v31 = vmul.f32 1.2045331, %v1036_v18  ;;  %v47_v32 = vadd.s32 40, %v1218_v5 }
  0x75   :  { %v837_v60 = vmax.f32 %v829_v25, 0.0  ;;  %v498_v34 = vsub.f32 1.0, %v490_v14  ;;  %v143_v35 = vmul.f32 21.43931, %v135_v20  ;;  %v390_v9 = vmax.f32 %v324_v26, %v382_v23 }
  0x76   :  { %v448_v39 = vmul.f32 0.85010636, %v440_v27  ;;  %v343_v41 = vmul.f32 %v1045_v29, %v1045_v29  ;;  %v210_v47 = vadd.f32 %v202_v30, %v1228_v45  ;;  %v1054_v52 = vadd.f32 0.30831257, %v1365_v11 }
  0x77   :  { %v1099_v21 = vpop.eup %1098  ;;  %v845_v33 = vmin.f32 %v837_v60, 1.0  ;;  %v277_v57 = vmul.f32 %v268_v31, %v268_v31  ;;  %v1072_v51 = vadd.f32 0.10666872, %v1365_v11  ;;  %v67_v53 = vcvt.s32.f32 %v47_v32  ;;  %v798_v60 = vld [vmem:[#allocation6 + $0x10] sm:$0xff] }
  0x78   :  { %v1101_v37 = vpop.eup %1100  ;;  %v599_v40 = vmul.f32 %v1099_v21, %v1391_v6  ;;  %v506_v62 = vmax.f32 %v498_v34, 0.0  ;;  %v151_v55 = vsub.f32 1.0, %v143_v35  ;;  %v1063_v58 = vadd.f32 0.5291064, %v1365_v11 }
  0x79   :  { %853 = vst [vmem:[#allocation7 + $0x8] sm:$0xff] %v845_v33  ;;  %v700_v42 = vmax.f32 %v521_v28, %v1101_v37  ;;  %v456_v1 = vmax.f32 %v390_v9, %v448_v39  ;;  %vm605_vm14 = vcmp.eq.f32.partialorder %v1391_v6, inf  ;;  %v351_v4 = vadd.f32 %v343_v41, %v1236_v56 }
  0x7a   :  { %v600_v49 = vmul.f32 %v1099_v21, %v599_v40  ;;  %vm607_vm15 = vcmp.eq.f32.partialorder %v1391_v6, 0.0  ;;  %v218_v8 = vmul.f32 16.33122, %v210_v47  ;;  %v409_v13 = vmul.f32 %v1054_v52, %v1054_v52 }
  0x7b   :  { %v708_v54 = vmul.f32 0.8789772, %v700_v42  ;;  %v608_v16 = vand.u32 2147483648, %v1391_v6  ;;  %v285_v17 = vadd.f32 %v277_v57, %v1230_v46  ;;  %v541_v22 = vmul.f32 0.72722656, %v1072_v51 }
  0x7c   :  { %v601_v2 = vmul.f32 0.5, %v600_v49  ;;  %v514_v11 = vmul.f32 0.9668076, %v506_v62  ;;  %v159_v24 = vmax.f32 %v151_v55, 0.0  ;;  %v475_v18 = vmul.f32 %v1063_v58, %v1063_v58 }
  0x7d   :  { %v716_v7 = vmax.f32 %v708_v54, 0.0  ;;  %v359_v14 = vmul.f32 42.017765, %v351_v4  ;;  %v550_v20 = vmul.f32 %v541_v22, %v541_v22  ;;  %v75_v25 = vmul.f32 2.0, %v67_v53 }
  0x7e   :  { %v602_v15 = vsub.f32 1.5, %v601_v2  ;;  %v226_v26 = vsub.f32 1.0, %v218_v8  ;;  %v417_v27 = vadd.f32 %v409_v13, %v1238_v59  ;;  %v293_v30 = vmul.f32 38.121483, %v285_v17 }
  0x7f   :  { %v726_v0 = vmul.f32 %v1315_v12, %v716_v7  ;;  %v1420_v31 = vadd.f32 %v550_v20, %v1244_v10  ;;  %v90_v32 = vmul.f32 %v1221_v19, %v75_v25  ;;  %v167_v34 = vmul.f32 0.98712, %v159_v24 }
  0x80   :  { %v603_v23 = vmul.f32 %v1099_v21, %v602_v15  ;;  %v483_v35 = vadd.f32 %v475_v18, %v1240_v61  ;;  %v367_v41 = vsub.f32 1.0, %v359_v14  ;;  %v425_v42 = vmul.f32 23.335613, %v417_v27 }
  0x81   :  { %vm734_vm0 = vcmp.gt.f32.partialorder %v726_v0, 0.2  ;;  %vm742_vm1 = vcmp.le.f32.partialorder %v726_v0, 0.25  ;;  %1102 = vrsqrt.f32 %v1420_v31  ;;  %v1443_v52 = vmax.f32 %v456_v1, %v514_v11 }
  0x82   :  { %vm1414_vm2 = vmand %vm734_vm0, %vm742_vm1  ;;  %v604_v28 = vmul.f32 %v603_v23, %v1391_v6  ;;  %v98_v57 = vadd.f32 -1.0, %v90_v32  ;;  %v175_v51 = vmax.f32 %v167_v34, 0.0  ;;  %v234_v53 = vmax.f32 %v226_v26, 0.0 }
  0x83   :  { %v1426_v21 = vsel %vm1414_vm2, 0.06872161, %v1192_v43  ;;  %v766_v33 = vsel %vm1414_vm2, 0.65, %v1192_v43  ;;  %v301_v54 = vsub.f32 1.0, %v293_v30  ;;  %v375_v7 = vmax.f32 %v367_v41, 0.0 }
  0x84   :  { %v1433_v37 = vsub.f32 1.0, %v1426_v21  ;;  %v814_v9 = vmul.f32 %v766_v33, %v1426_v21  ;;  %v606_v39 = vsel %vm605_vm14, %v1391_v6, %v604_v28  ;;  %v1445_v62 = vmul.f32 255.2084, %v483_v35 }
  0x85   :  { %v609_v40 = vsel %vm607_vm15, %v608_v16, %v606_v39  ;;  %v1019_v2 = vadd.f32 -0.08616902, %v98_v57  ;;  %v1028_v4 = vadd.f32 -0.34765202, %v98_v57  ;;  %v433_v6 = vsub.f32 1.0, %v425_v42 }
  0x86   :  { %v806_v47 = vmul.f32 %v798_v60, %v1433_v37  ;;  %v661_v49 = vsub.f32 0.0, %v609_v40  ;;  %v1037_v8 = vadd.f32 -0.23426315, %v98_v57  ;;  %v1046_v13 = vadd.f32 0.14360133, %v98_v57 }
  0x87   :  { %v1103_v15 = vpop.eup %1102  ;;  %v128_v17 = vmul.f32 %v1019_v2, %v1019_v2  ;;  %v194_v22 = vmul.f32 0.7695844, %v1028_v4  ;;  %v242_v11 = vmul.f32 0.8130255, %v234_v53  ;;  %v1055_v25 = vadd.f32 0.30831257, %v98_v57 }
  0x88   :  { %v822_v55 = vadd.f32 %v814_v9, %v806_v47  ;;  %v669_v58 = vmul.f32 6.421995, %v661_v49  ;;  %v611_v24 = vmul.f32 %v1103_v15, %v1420_v31  ;;  %v269_v18 = vmul.f32 1.2045331, %v1037_v8 }
  0x89   :  { %v136_v14 = vadd.f32 %v128_v17, %v1225_v36  ;;  %v203_v20 = vmul.f32 %v194_v22, %v194_v22  ;;  %v344_v30 = vmul.f32 %v1046_v13, %v1046_v13  ;;  %v48_v33 = vadd.s32 48, %v1218_v5 }
  0x8a   :  { %v830_v1 = vsel %vm1414_vm2, %v822_v55, %v798_v60  ;;  %v677_v16 = vadd.f32 -0.22851455, %v669_v58  ;;  %v612_v27 = vmul.f32 %v1103_v15, %v611_v24  ;;  %v278_v28 = vmul.f32 %v269_v18, %v269_v18 }
  0x8b   :  { %v838_v0 = vmax.f32 %v830_v1, 0.0  ;;  %v144_v32 = vmul.f32 21.43931, %v136_v14  ;;  %v211_v60 = vadd.f32 %v203_v20, %v1228_v45  ;;  %v309_v34 = vmax.f32 %v301_v54, 0.0 }
  0x8c   :  { %v688_v23 = vmul.f32 1.442695, %v677_v16  ;;  %v499_v35 = vsub.f32 1.0, %v1445_v62  ;;  %v613_v9 = vmul.f32 0.5, %v612_v27  ;;  %v286_v39 = vadd.f32 %v278_v28, %v1230_v46 }
  0x8d   :  { %v846_v26 = vmin.f32 %v838_v0, 1.0  ;;  %v383_v40 = vmul.f32 0.62491184, %v375_v7  ;;  %v441_v41 = vmax.f32 %v433_v6, 0.0  ;;  %v152_v42 = vsub.f32 1.0, %v144_v32 }
  0x8e   :  { %1104 = vpow2.f32 %v688_v23  ;;  %v219_v47 = vmul.f32 16.33122, %v211_v60  ;;  %v250_v49 = vmax.f32 %v175_v51, %v242_v11  ;;  %v614_v53 = vsub.f32 1.5, %v613_v9 }
  0x8f   :  { %854 = vst [vmem:[#allocation7 + $0x10] sm:$0xff] %v846_v26  ;;  %v352_v55 = vadd.f32 %v344_v30, %v1236_v56  ;;  %v410_v58 = vmul.f32 %v1055_v25, %v1055_v25  ;;  %v294_v2 = vmul.f32 38.121483, %v286_v39  ;;  %v1064_v4 = vadd.f32 0.5291064, %v98_v57 }
  0x90   :  { %v1073_v8 = vadd.f32 0.10666872, %v98_v57  ;;  %v68_v13 = vcvt.s32.f32 %v48_v33  ;;  %v317_v1 = vmul.f32 0.74151653, %v309_v34  ;;  %v615_v54 = vmul.f32 %v1103_v15, %v614_v53 }
  0x91   :  { %v160_v16 = vmax.f32 %v152_v42, 0.0  ;;  %v227_v62 = vsub.f32 1.0, %v219_v47  ;;  %vm617_vm3 = vcmp.eq.f32.partialorder %v1420_v31, inf  ;;  %vm619_vm4 = vcmp.eq.f32.partialorder %v1420_v31, 0.0 }
  0x92   :  { %v620_v7 = vand.u32 2147483648, %v1420_v31  ;;  %v542_v51 = vmul.f32 0.72722656, %v1073_v8  ;;  %v616_v22 = vmul.f32 %v615_v54, %v1420_v31  ;;  %v360_v0 = vmul.f32 42.017765, %v352_v55 }
  0x93   :  { %v418_v57 = vadd.f32 %v410_v58, %v1238_v59  ;;  %v302_v11 = vsub.f32 1.0, %v294_v2  ;;  %v476_v24 = vmul.f32 %v1064_v4, %v1064_v4  ;;  %v76_v18 = vmul.f32 2.0, %v68_v13  ;;  %v799_v2 = vld [vmem:[#allocation6 + $0x18] sm:$0xff] }
  0x94   :  { %v1105_v17 = vpop.eup %1104  ;;  %v551_v15 = vmul.f32 %v542_v51, %v542_v51  ;;  %v618_v14 = vsel %vm617_vm3, %v1420_v31, %v616_v22  ;;  %v168_v20 = vmul.f32 0.98712, %v160_v16  ;;  %v235_v25 = vmax.f32 %v227_v62, 0.0 }
  0x95   :  { %v701_v6 = vmax.f32 %v1443_v52, %v1105_v17  ;;  %v325_v26 = vmax.f32 %v250_v49, %v317_v1  ;;  %v507_v27 = vmax.f32 %v499_v35, 0.0  ;;  %v621_v28 = vsel %vm619_vm4, %v620_v7, %v618_v14 }
  0x96   :  { %v1466_v52 = vadd.f32 %v551_v15, %v1244_v10  ;;  %v662_v32 = vsub.f32 0.0, %v621_v28  ;;  %v368_v60 = vsub.f32 1.0, %v360_v0  ;;  %v426_v33 = vmul.f32 23.335613, %v418_v57 }
  0x97   :  { %v709_v23 = vmul.f32 0.8789772, %v701_v6  ;;  %v310_v34 = vmax.f32 %v302_v11, 0.0  ;;  %v484_v9 = vadd.f32 %v476_v24, %v1240_v61  ;;  %v91_v39 = vmul.f32 %v1221_v19, %v76_v18 }
  0x98   :  { %1106 = vrsqrt.f32 %v1466_v52  ;;  %v670_v35 = vmul.f32 6.421995, %v662_v32  ;;  %v176_v47 = vmax.f32 %v168_v20, 0.0  ;;  %v243_v31 = vmul.f32 0.8130255, %v235_v25 }
  0x99   :  { %v717_v30 = vmax.f32 %v709_v23, 0.0  ;;  %v391_v49 = vmax.f32 %v325_v26, %v383_v40  ;;  %v449_v53 = vmul.f32 0.85010636, %v441_v41  ;;  %v515_v55 = vmul.f32 0.9668076, %v507_v27 }
  0x9a   :  { %v49_v58 = vadd.s32 56, %v1218_v5  ;;  %v678_v4 = vadd.f32 -0.22851455, %v670_v35  ;;  %v434_v8 = vsub.f32 1.0, %v426_v33  ;;  %v318_v1 = vmul.f32 0.74151653, %v310_v34 }
  0x9b   :  { %v727_v42 = vmul.f32 %v1315_v12, %v717_v30  ;;  %v376_v54 = vmax.f32 %v368_v60, 0.0  ;;  %v492_v16 = vmul.f32 255.2084, %v484_v9  ;;  %v1477_v62 = vadd.f32 -1.0, %v91_v39 }
  0x9c   :  { %v690_v41 = vmul.f32 1.442695, %v678_v4  ;;  %v251_v17 = vmax.f32 %v176_v47, %v243_v31  ;;  %v457_v22 = vmax.f32 %v391_v49, %v449_v53  ;;  %v442_v57 = vmax.f32 %v434_v8, 0.0 }
  0x9d   :  { %vm735_vm5 = vcmp.gt.f32.partialorder %v727_v42, 0.2  ;;  %vm743_vm6 = vcmp.le.f32.partialorder %v727_v42, 0.25  ;;  %v1020_v0 = vadd.f32 -0.08616902, %v1477_v62  ;;  %v500_v18 = vsub.f32 1.0, %v492_v16 }
  0x9e   :  { %vm1473_vm7 = vmand %vm735_vm5, %vm743_vm6  ;;  %v1107_v7 = vpop.eup %1106  ;;  %1108 = vpow2.f32 %v690_v41  ;;  %v1029_v24 = vadd.f32 -0.34765202, %v1477_v62  ;;  %v69_v23 = vcvt.s32.f32 %v49_v58  ;;  %v326_v14 = vmax.f32 %v251_v17, %v318_v1 }
  0x9f   :  { %v1482_v40 = vsel %vm1473_vm7, 0.06872161, %v1192_v43  ;;  %v767_v5 = vsel %vm1473_vm7, 0.65, %v1192_v43  ;;  %v623_v11 = vmul.f32 %v1107_v7, %v1466_v52  ;;  %v384_v20 = vmul.f32 0.62491184, %v376_v54 }
  0xa0   :  { %v1488_v51 = vsub.f32 1.0, %v1482_v40  ;;  %v815_v6 = vmul.f32 %v767_v5, %v1482_v40  ;;  %v523_v27 = vmax.f32 %v457_v22, %v515_v55  ;;  %v129_v28 = vmul.f32 %v1020_v0, %v1020_v0 }
  0xa1   :  { %v624_v25 = vmul.f32 %v1107_v7, %v623_v11  ;;  %v450_v30 = vmul.f32 0.85010636, %v442_v57  ;;  %v195_v60 = vmul.f32 0.7695844, %v1029_v24  ;;  %v508_v34 = vmax.f32 %v500_v18, 0.0 }
  0xa2   :  { %v807_v15 = vmul.f32 %v799_v2, %v1488_v51  ;;  %vm629_vm9 = vcmp.eq.f32.partialorder %v1466_v52, inf  ;;  %v77_v9 = vmul.f32 2.0, %v69_v23  ;;  %v392_v35 = vmax.f32 %v326_v14, %v384_v20 }
  0xa3   :  { %v625_v32 = vmul.f32 0.5, %v624_v25  ;;  %v1038_v31 = vadd.f32 -0.23426315, %v1477_v62  ;;  %vm631_vm10 = vcmp.eq.f32.partialorder %v1466_v52, 0.0  ;;  %v632_v53 = vand.u32 2147483648, %v1466_v52 }
  0xa4   :  { %v823_v26 = vadd.f32 %v815_v6, %v807_v15  ;;  %v1109_v39 = vpop.eup %1108  ;;  %v137_v55 = vadd.f32 %v129_v28, %v1225_v36  ;;  %v1047_v8 = vadd.f32 0.14360133, %v1477_v62  ;;  %v516_v54 = vmul.f32 0.9668076, %v508_v34 }
  0xa5   :  { %v626_v47 = vsub.f32 1.5, %v625_v32  ;;  %v702_v49 = vmax.f32 %v523_v27, %v1109_v39  ;;  %v1056_v16 = vadd.f32 0.30831257, %v1477_v62  ;;  %v458_v5 = vmax.f32 %v392_v35, %v450_v30 }
  0xa6   :  { %v831_v33 = vsel %vm1473_vm7, %v823_v26, %v799_v2  ;;  %v204_v2 = vmul.f32 %v195_v60, %v195_v60  ;;  %v270_v17 = vmul.f32 1.2045331, %v1038_v31  ;;  %v1065_v6 = vadd.f32 0.5291064, %v1477_v62 }
  0xa7   :  { %v839_v42 = vmax.f32 %v831_v33, 0.0  ;;  %v627_v4 = vmul.f32 %v1107_v7, %v626_v47  ;;  %v710_v1 = vmul.f32 0.8789772, %v702_v49  ;;  %v145_v0 = vmul.f32 21.43931, %v137_v55 }
  0xa8   :  { %v212_v57 = vadd.f32 %v204_v2, %v1228_v45  ;;  %v345_v11 = vmul.f32 %v1047_v8, %v1047_v8  ;;  %v92_v24 = vmul.f32 %v1221_v19, %v77_v9  ;;  %v411_v23 = vmul.f32 %v1056_v16, %v1056_v16  ;;  %v800_v19 = vld [vmem:[#allocation6 + $0x20] sm:$0xff] }
  0xa9   :  { %v847_v58 = vmin.f32 %v839_v42, 1.0  ;;  %v628_v41 = vmul.f32 %v627_v4, %v1466_v52  ;;  %v718_v22 = vmax.f32 %v710_v1, 0.0  ;;  %v1514_v14 = vmax.f32 %v458_v5, %v516_v54 }
  0xaa   :  { %v279_v25 = vmul.f32 %v270_v17, %v270_v17  ;;  %v477_v26 = vmul.f32 %v1065_v6, %v1065_v6  ;;  %v153_v27 = vsub.f32 1.0, %v145_v0  ;;  %v1074_v28 = vadd.f32 0.10666872, %v1477_v62 }
  0xab   :  { %855 = vst [vmem:[#allocation7 + $0x18] sm:$0xff] %v847_v58  ;;  %v630_v7 = vsel %vm629_vm9, %v1466_v52, %v628_v41  ;;  %v728_v15 = vmul.f32 %v1315_v12, %v718_v22  ;;  %v220_v60 = vmul.f32 16.33122, %v212_v57  ;;  %v353_v52 = vadd.f32 %v345_v11, %v1236_v56 }
  0xac   :  { %v633_v18 = vsel %vm631_vm10, %v632_v53, %v630_v7  ;;  %v1522_v33 = vadd.f32 -1.0, %v92_v24  ;;  %v419_v9 = vadd.f32 %v411_v23, %v1238_v59  ;;  %v543_v39 = vmul.f32 0.72722656, %v1074_v28 }
  0xad   :  { %v663_v20 = vsub.f32 0.0, %v633_v18  ;;  %vm736_vm11 = vcmp.gt.f32.partialorder %v728_v15, 0.2  ;;  %vm744_vm12 = vcmp.le.f32.partialorder %v728_v15, 0.25  ;;  %v287_v31 = vadd.f32 %v279_v25, %v1230_v46 }
  0xae   :  { %vm1517_vm14 = vmand %vm736_vm11, %vm744_vm12  ;;  %v161_v49 = vmax.f32 %v153_v27, 0.0  ;;  %v552_v53 = vmul.f32 %v543_v39, %v543_v39  ;;  %v1021_v55 = vadd.f32 -0.08616902, %v1522_v33  ;;  %v1030_v58 = vadd.f32 -0.34765202, %v1522_v33 }
  0xaf   :  { %v671_v32 = vmul.f32 6.421995, %v663_v20  ;;  %v1527_v34 = vsel %vm1517_vm14, 0.06872161, %v1192_v43  ;;  %v768_v62 = vsel %vm1517_vm14, 0.65, %v1192_v43 }
  0xb0   :  { %v1534_v42 = vsub.f32 1.0, %v1527_v34  ;;  %v816_v35 = vmul.f32 %v768_v62, %v1527_v34  ;;  %v361_v8 = vmul.f32 42.017765, %v353_v52  ;;  %v1039_v1 = vadd.f32 -0.23426315, %v1522_v33 }
  0xb1   :  { %v679_v47 = vadd.f32 -0.22851455, %v671_v32  ;;  %v1543_v54 = vadd.f32 %v552_v53, %v1244_v10  ;;  %v130_v16 = vmul.f32 %v1021_v55, %v1021_v55  ;;  %v196_v5 = vmul.f32 0.7695844, %v1030_v58 }
  0xb2   :  { %v808_v4 = vmul.f32 %v800_v19, %v1534_v42  ;;  %v1048_v41 = vadd.f32 0.14360133, %v1522_v33  ;;  %v228_v6 = vsub.f32 1.0, %v220_v60  ;;  %v271_v22 = vmul.f32 1.2045331, %v1039_v1 }
  0xb3   :  { %v692_v2 = vmul.f32 1.442695, %v679_v47  ;;  %v169_v0 = vmul.f32 0.98712, %v161_v49  ;;  %v295_v7 = vmul.f32 38.121483, %v287_v31  ;;  %v138_v24 = vadd.f32 %v130_v16, %v1225_v36 }
  0xb4   :  { %v824_v17 = vadd.f32 %v816_v35, %v808_v4  ;;  %v427_v57 = vmul.f32 23.335613, %v419_v9  ;;  %v205_v15 = vmul.f32 %v196_v5, %v196_v5  ;;  %v280_v18 = vmul.f32 %v271_v22, %v271_v22 }
  0xb5   :  { %1110 = vpow2.f32 %v692_v2  ;;  %v369_v20 = vsub.f32 1.0, %v361_v8  ;;  %v346_v25 = vmul.f32 %v1048_v41, %v1048_v41  ;;  %v1057_v27 = vadd.f32 0.30831257, %v1522_v33 }
  0xb6   :  { %1112 = vrsqrt.f32 %v1543_v54  ;;  %v832_v11 = vsel %vm1517_vm14, %v824_v17, %v800_v19  ;;  %v236_v28 = vmax.f32 %v228_v6, 0.0  ;;  %v146_v32 = vmul.f32 21.43931, %v138_v24 }
  0xb7   :  { %v840_v23 = vmax.f32 %v832_v11, 0.0  ;;  %v213_v60 = vadd.f32 %v205_v15, %v1228_v45  ;;  %v288_v52 = vadd.f32 %v280_v18, %v1230_v46  ;;  %v303_v9 = vsub.f32 1.0, %v295_v7 }
  0xb8   :  { %v435_v39 = vsub.f32 1.0, %v427_v57  ;;  %v485_v19 = vadd.f32 %v477_v26, %v1240_v61  ;;  %v177_v36 = vmax.f32 %v169_v0, 0.0  ;;  %v154_v47 = vsub.f32 1.0, %v146_v32 }
  0xb9   :  { %v848_v62 = vmin.f32 %v840_v23, 1.0  ;;  %v221_v31 = vmul.f32 16.33122, %v213_v60  ;;  %v1066_v49 = vadd.f32 0.5291064, %v1522_v33  ;;  %v377_v58 = vmax.f32 %v369_v20, 0.0 }
  0xba   :  { %v354_v45 = vadd.f32 %v346_v25, %v1236_v56  ;;  %v412_v4 = vmul.f32 %v1057_v27, %v1057_v27  ;;  %v244_v46 = vmul.f32 0.8130255, %v236_v28  ;;  %v162_v8 = vmax.f32 %v154_v47, 0.0 }
  0xbb   :  { %v1111_v35 = vpop.eup %1110  ;;  %856 = vst [vmem:[#allocation7 + $0x20] sm:$0xff] %v848_v62  ;;  %v296_v1 = vmul.f32 38.121483, %v288_v52  ;;  %v311_v16 = vmax.f32 %v303_v9, 0.0  ;;  %v443_v5 = vmax.f32 %v435_v39, 0.0  ;;  %v229_v41 = vsub.f32 1.0, %v221_v31 }
  0xbc   :  { %v1113_v53 = vpop.eup %1112  ;;  %v703_v55 = vmax.f32 %v1514_v14, %v1111_v35  ;;  %v493_v17 = vmul.f32 255.2084, %v485_v19  ;;  %v478_v22 = vmul.f32 %v1066_v49, %v1066_v49  ;;  %v1075_v0 = vadd.f32 0.10666872, %v1522_v33  ;;  %v801_v62 = vld [vmem:[#allocation6 + $0x28] sm:$0xff] }
  0xbd   :  { %v635_v2 = vmul.f32 %v1113_v53, %v1543_v54  ;;  %v385_v14 = vmul.f32 0.62491184, %v377_v58  ;;  %v362_v57 = vmul.f32 42.017765, %v354_v45  ;;  %v420_v56 = vadd.f32 %v412_v4, %v1238_v59 }
  0xbe   :  { %v711_v26 = vmul.f32 0.8789772, %v703_v55  ;;  %v252_v11 = vmax.f32 %v177_v36, %v244_v46  ;;  %v170_v15 = vmul.f32 0.98712, %v162_v8  ;;  %v304_v18 = vsub.f32 1.0, %v296_v1 }
  0xbf   :  { %v636_v6 = vmul.f32 %v1113_v53, %v635_v2  ;;  %v319_v20 = vmul.f32 0.74151653, %v311_v16  ;;  %vm641_vm15 = vcmp.eq.f32.partialorder %v1543_v54, inf  ;;  %v237_v25 = vmax.f32 %v229_v41, 0.0 }
  0xc0   :  { %v719_v7 = vmax.f32 %v711_v26, 0.0  ;;  %v644_v28 = vand.u32 2147483648, %v1543_v54  ;;  %v486_v33 = vadd.f32 %v478_v22, %v1240_v61  ;;  %v544_v32 = vmul.f32 0.72722656, %v1075_v0 }
  0xc1   :  { %v637_v24 = vmul.f32 0.5, %v636_v6  ;;  %v370_v60 = vsub.f32 1.0, %v362_v57  ;;  %v428_v59 = vmul.f32 23.335613, %v420_v56  ;;  %v178_v39 = vmax.f32 %v170_v15, 0.0 }
  0xc2   :  { %v729_v23 = vmul.f32 %v1315_v12, %v719_v7  ;;  %v312_v19 = vmax.f32 %v304_v18, 0.0  ;;  %v553_v35 = vmul.f32 %v544_v32, %v544_v32  ;;  %v245_v47 = vmul.f32 0.8130255, %v237_v25 }
  0xc3   :  { %v638_v27 = vsub.f32 1.5, %v637_v24  ;;  %vm643_vm4 = vcmp.eq.f32.partialorder %v1543_v54, 0.0  ;;  %v327_v55 = vmax.f32 %v252_v11, %v319_v20  ;;  %v501_v58 = vsub.f32 1.0, %v493_v17 }
  0xc4   :  { %vm737_vm0 = vcmp.gt.f32.partialorder %v729_v23, 0.2  ;;  %vm745_vm1 = vcmp.le.f32.partialorder %v729_v23, 0.25  ;;  %v378_v45 = vmax.f32 %v370_v60, 0.0  ;;  %v1583_v4 = vadd.f32 %v553_v35, %v1244_v10 }
  0xc5   :  { %vm1564_vm3 = vmand %vm737_vm0, %vm745_vm1  ;;  %v639_v9 = vmul.f32 %v1113_v53, %v638_v27  ;;  %v436_v8 = vsub.f32 1.0, %v428_v59  ;;  %v494_v1 = vmul.f32 255.2084, %v486_v33  ;;  %v253_v16 = vmax.f32 %v178_v39, %v245_v47 }
  0xc6   :  { %v1571_v36 = vsel %vm1564_vm3, 0.06872161, %v1192_v43  ;;  %v769_v61 = vsel %vm1564_vm3, 0.65, %v1192_v43  ;;  %v320_v41 = vmul.f32 0.74151653, %v312_v19  ;;  %1114 = vrsqrt.f32 %v1583_v4 }
  0xc7   :  { %v1577_v31 = vsub.f32 1.0, %v1571_v36  ;;  %v817_v49 = vmul.f32 %v769_v61, %v1571_v36  ;;  %v640_v53 = vmul.f32 %v639_v9, %v1543_v54  ;;  %v451_v17 = vmul.f32 0.85010636, %v443_v5 }
  0xc8   :  { %v509_v0 = vmax.f32 %v501_v58, 0.0  ;;  %v393_v7 = vmax.f32 %v327_v55, %v385_v14  ;;  %v386_v56 = vmul.f32 0.62491184, %v378_v45  ;;  %v328_v24 = vmax.f32 %v253_v16, %v320_v41  ;;  %v861_v58 = vld [vmem:[#allocation6 + $0x40] sm:$0xff]  ;;  %v863_v16 = vld [vmem:[#allocation6 + $0x50] sm:$0xff]  ;;  %v864_v41 = vld [vmem:[#allocation6 + $0x58] sm:$0xff] }
  0xc9   :  { %v809_v46 = vmul.f32 %v801_v62, %v1577_v31  ;;  %v642_v2 = vsel %vm641_vm15, %v1543_v54, %v640_v53  ;;  %v444_v54 = vmax.f32 %v436_v8, 0.0  ;;  %v502_v15 = vsub.f32 1.0, %v494_v1 }
  0xca   :  { %v645_v26 = vsel %vm643_vm4, %v644_v28, %v642_v2  ;;  %v517_v25 = vmul.f32 0.9668076, %v509_v0  ;;  %v459_v5 = vmax.f32 %v393_v7, %v451_v17  ;;  %v394_v33 = vmax.f32 %v328_v24, %v386_v56 }
  0xcb   :  { %v825_v6 = vadd.f32 %v817_v49, %v809_v46  ;;  %v664_v22 = vsub.f32 0.0, %v645_v26  ;;  %v452_v32 = vmul.f32 0.85010636, %v444_v54  ;;  %v510_v60 = vmax.f32 %v502_v15, 0.0  ;;  %v862_v46 = vld [vmem:[#allocation6 + $0x48] sm:$0xff] }
  0xcc   :  { %v1115_v23 = vpop.eup %1114  ;;  %vm653_vm5 = vcmp.eq.f32.partialorder %v1583_v4, inf  ;;  %vm655_vm6 = vcmp.eq.f32.partialorder %v1583_v4, 0.0  ;;  %v656_v47 = vand.u32 2147483648, %v1583_v4  ;;  %v772_v55 = vsel %vm1329_vm8, 0.4, %v1192_v43 }
  0xcd   :  { %v833_v10 = vsel %vm1564_vm3, %v825_v6, %v801_v62  ;;  %v672_v57 = vmul.f32 6.421995, %v664_v22  ;;  %v647_v28 = vmul.f32 %v1115_v23, %v1583_v4  ;;  %v525_v62 = vmax.f32 %v459_v5, %v517_v25 }
  0xce   :  { %v841_v11 = vmax.f32 %v833_v10, 0.0  ;;  %v460_v9 = vmax.f32 %v394_v33, %v452_v32  ;;  %v518_v39 = vmul.f32 0.9668076, %v510_v60  ;;  %v773_v45 = vsel %vm1371_vm13, 0.4, %v1192_v43  ;;  %v865_v33 = vld [vmem:[#allocation6 + $0x60] sm:$0xff] }
  0xcf   :  { %v680_v18 = vadd.f32 -0.22851455, %v672_v57  ;;  %v648_v14 = vmul.f32 %v1115_v23, %v647_v28  ;;  %v869_v8 = vmul.f32 %v861_v58, %v1345_v50  ;;  %v877_v1 = vmul.f32 %v772_v55, %v1338_v44  ;;  %v866_v55 = vld [vmem:[#allocation6 + $0x68] sm:$0xff] }
  0xd0   :  { %v849_v20 = vmin.f32 %v841_v11, 1.0  ;;  %v1596_v53 = vmax.f32 %v460_v9, %v518_v39  ;;  %v870_v26 = vmul.f32 %v862_v46, %v1386_v63  ;;  %v878_v22 = vmul.f32 %v773_v45, %v1379_v3 }
  0xd1   :  { %v694_v27 = vmul.f32 1.442695, %v680_v18  ;;  %v649_v59 = vmul.f32 0.5, %v648_v14  ;;  %v774_v17 = vsel %vm1414_vm2, 0.4, %v1192_v43  ;;  %v871_v0 = vmul.f32 %v863_v16, %v1433_v37 }
  0xd2   :  { %857 = vst [vmem:[#allocation7 + $0x28] sm:$0xff] %v849_v20  ;;  %v885_v7 = vadd.f32 %v877_v1, %v869_v8  ;;  %v879_v57 = vmul.f32 %v774_v17, %v1426_v21  ;;  %v775_v56 = vsel %vm1473_vm7, 0.4, %v1192_v43  ;;  %v886_v54 = vadd.f32 %v878_v22, %v870_v26 }
  0xd3   :  { %1116 = vpow2.f32 %v694_v27  ;;  %v650_v19 = vsub.f32 1.5, %v649_v59  ;;  %v872_v15 = vmul.f32 %v864_v41, %v1488_v51  ;;  %v880_v25 = vmul.f32 %v775_v56, %v1482_v40 }
  0xd4   :  { %v887_v20 = vadd.f32 %v879_v57, %v871_v0  ;;  %v894_v5 = vsel %vm1371_vm13, %v886_v54, %v862_v46  ;;  %v777_v22 = vsel %vm1564_vm3, 0.4, %v1192_v43  ;;  %v874_v17 = vmul.f32 %v866_v55, %v1577_v31 }
  0xd5   :  { %v651_v61 = vmul.f32 %v1115_v23, %v650_v19  ;;  %v893_v23 = vsel %vm1329_vm8, %v885_v7, %v861_v58  ;;  %v902_v60 = vmax.f32 %v894_v5, 0.0  ;;  %v888_v59 = vadd.f32 %v880_v25, %v872_v15  ;;  %v802_v19 = vld [vmem:[#allocation6 + $0x30] sm:$0xff] }
  0xd6   :  { %v901_v28 = vmax.f32 %v893_v23, 0.0  ;;  %v895_v14 = vsel %vm1414_vm2, %v887_v20, %v863_v16  ;;  %v882_v56 = vmul.f32 %v777_v22, %v1571_v36  ;;  %v784_v48 = vsel %vm1517_vm14, 0.25, %v1192_v43 }
  0xd7   :  { %v652_v2 = vmul.f32 %v651_v61, %v1583_v4  ;;  %v903_v9 = vmax.f32 %v895_v14, 0.0  ;;  %v910_v61 = vmin.f32 %v902_v60, 1.0 }
  0xd8   :  { %v890_v25 = vadd.f32 %v882_v56, %v874_v17 }
  0xd9   :  { %v1117_v35 = vpop.eup %1116  ;;  %v654_v10 = vsel %vm653_vm5, %v1583_v4, %v652_v2  ;;  %v776_v4 = vsel %vm1517_vm14, 0.4, %v1192_v43  ;;  %v911_v46 = vmin.f32 %v903_v9, 1.0  ;;  %919 = vst [vmem:[#allocation7 + $0x48] sm:$0xff] %v910_v61 }
  0xda   :  { %v704_v49 = vmax.f32 %v525_v62, %v1117_v35  ;;  %v657_v24 = vsel %vm655_vm6, %v656_v47, %v654_v10  ;;  %v909_v62 = vmin.f32 %v901_v28, 1.0  ;;  %v896_v47 = vsel %vm1473_vm7, %v888_v59, %v864_v41  ;;  %v867_v41 = vld [vmem:[#allocation6 + $0x70] sm:$0xff]  ;;  %v927_v10 = vld [vmem:[#allocation6 + $0x80] sm:$0xff] }
  0xdb   :  { %v665_v18 = vsub.f32 0.0, %v657_v24  ;;  %v881_v2 = vmul.f32 %v776_v4, %v1527_v34  ;;  %v904_v16 = vmax.f32 %v896_v47, 0.0  ;;  %920 = vst [vmem:[#allocation7 + $0x50] sm:$0xff] %v911_v46  ;;  %v781_v4 = vsel %vm1371_vm13, 0.25, %v1192_v43 }
  0xdc   :  { %v712_v6 = vmul.f32 0.8789772, %v704_v49  ;;  %v873_v49 = vmul.f32 %v865_v33, %v1534_v42  ;;  %918 = vst [vmem:[#allocation7 + $0x40] sm:$0xff] %v909_v62  ;;  %v898_v59 = vsel %vm1564_vm3, %v890_v25, %v866_v55  ;;  %v944_v62 = vmul.f32 %v781_v4, %v1379_v3 }
  0xdd   :  { %v673_v32 = vmul.f32 6.421995, %v665_v18  ;;  %v912_v57 = vmin.f32 %v904_v16, 1.0  ;;  %v780_v18 = vsel %vm1329_vm8, 0.25, %v1192_v43  ;;  %v906_v9 = vmax.f32 %v898_v59, 0.0 }
  0xde   :  { %v720_v11 = vmax.f32 %v712_v6, 0.0  ;;  %v889_v6 = vadd.f32 %v881_v2, %v873_v49  ;;  %v943_v5 = vmul.f32 %v780_v18, %v1338_v44 }
  0xdf   :  { %v681_v35 = vadd.f32 -0.22851455, %v673_v32  ;;  %921 = vst [vmem:[#allocation7 + $0x58] sm:$0xff] %v912_v57  ;;  %v929_v32 = vld [vmem:[#allocation6 + $0x90] sm:$0xff]  ;;  %v914_v46 = vmin.f32 %v906_v9, 1.0 }
  0xe0   :  { %v730_v27 = vmul.f32 %v1315_v12, %v720_v11  ;;  %v928_v11 = vld [vmem:[#allocation6 + $0x88] sm:$0xff]  ;;  %v897_v24 = vsel %vm1517_vm14, %v889_v6, %v865_v33  ;;  %v937_v49 = vmul.f32 %v929_v32, %v1433_v37  ;;  %v931_v6 = vld [vmem:[#allocation6 + $0xa0] sm:$0xff]  ;;  %v783_v37 = vsel %vm1473_vm7, 0.25, %v1192_v43 }
  0xe1   :  { %v696_v26 = vmul.f32 1.442695, %v681_v35  ;;  %v905_v20 = vmax.f32 %v897_v24, 0.0  ;;  %v936_v33 = vmul.f32 %v928_v11, %v1386_v63  ;;  %923 = vst [vmem:[#allocation7 + $0x68] sm:$0xff] %v914_v46  ;;  %v939_v56 = vmul.f32 %v931_v6, %v1534_v42  ;;  %v933_v24 = vld [vmem:[#allocation6 + $0xb0] sm:$0xff] }
  0xe2   :  { %vm738_vm9 = vcmp.gt.f32.partialorder %v730_v27, 0.2  ;;  %vm746_vm10 = vcmp.le.f32.partialorder %v730_v27, 0.25  ;;  %v935_v27 = vmul.f32 %v927_v10, %v1345_v50 }
  0xe3   :  { %vm1634_vm11 = vmand %vm738_vm9, %vm746_vm10  ;;  %1118 = vpow2.f32 %v696_v26  ;;  %v913_v14 = vmin.f32 %v905_v20, 1.0  ;;  %v952_v63 = vadd.f32 %v944_v62, %v936_v33  ;;  %v934_v33 = vld [vmem:[#allocation6 + $0xb8] sm:$0xff] }
  0xe4   :  { %v1644_v58 = vsel %vm1634_vm11, 0.06872161, %v1192_v43  ;;  %v770_v45 = vsel %vm1634_vm11, 0.65, %v1192_v43  ;;  %v778_v0 = vsel %vm1634_vm11, 0.4, %v1192_v43  ;;  %v951_v35 = vadd.f32 %v943_v5, %v935_v27 }
  0xe5   :  { %v1651_v8 = vsub.f32 1.0, %v1644_v58  ;;  %v818_v1 = vmul.f32 %v770_v45, %v1644_v58  ;;  %v883_v15 = vmul.f32 %v778_v0, %v1644_v58  ;;  %922 = vst [vmem:[#allocation7 + $0x60] sm:$0xff] %v913_v14  ;;  %v930_v45 = vld [vmem:[#allocation6 + $0x98] sm:$0xff]  ;;  %v960_v16 = vsel %vm1371_vm13, %v952_v63, %v928_v11  ;;  %v932_v0 = vld [vmem:[#allocation6 + $0xa8] sm:$0xff] }
  0xe6   :  { %v959_v2 = vsel %vm1329_vm8, %v951_v35, %v927_v10  ;;  %v968_v17 = vmax.f32 %v960_v16, 0.0  ;;  %v947_v11 = vmul.f32 %v784_v48, %v1527_v34  ;;  %v786_v29 = vsel %vm1634_vm11, 0.25, %v1192_v43  ;;  %v803_v27 = vld [vmem:[#allocation6 + $0x38] sm:$0xff] }
  0xe7   :  { %v810_v7 = vmul.f32 %v802_v19, %v1651_v8  ;;  %v875_v54 = vmul.f32 %v867_v41, %v1651_v8  ;;  %v967_v26 = vmax.f32 %v959_v2, 0.0  ;;  %v941_v25 = vmul.f32 %v933_v24, %v1651_v8  ;;  %v868_v5 = vld [vmem:[#allocation6 + $0x78] sm:$0xff] }
  0xe8   :  { %v976_v57 = vmin.f32 %v968_v17, 1.0  ;;  %v955_v20 = vadd.f32 %v947_v11, %v939_v56  ;;  %v949_v4 = vmul.f32 %v786_v29, %v1644_v58 }
  0xe9   :  { %v826_v23 = vadd.f32 %v818_v1, %v810_v7  ;;  %v891_v28 = vadd.f32 %v883_v15, %v875_v54  ;;  %v1119_v61 = vpop.eup %1118  ;;  %v975_v38 = vmin.f32 %v967_v26, 1.0  ;;  %v946_v7 = vmul.f32 %v783_v37, %v1482_v40 }
  0xea   :  { %v705_v3 = vmax.f32 %v1596_v53, %v1119_v61  ;;  %v938_v53 = vmul.f32 %v930_v45, %v1488_v51  ;;  %v785_v40 = vsel %vm1564_vm3, 0.25, %v1192_v43  ;;  %v940_v15 = vmul.f32 %v932_v0, %v1577_v31  ;;  %985 = vst [vmem:[#allocation7 + $0x88] sm:$0xff] %v976_v57 }
  0xeb   :  { %v834_v60 = vsel %vm1634_vm11, %v826_v23, %v802_v19  ;;  %v899_v44 = vsel %vm1634_vm11, %v891_v28, %v867_v41  ;;  %v782_v19 = vsel %vm1414_vm2, 0.25, %v1192_v43  ;;  %984 = vst [vmem:[#allocation7 + $0x80] sm:$0xff] %v975_v38  ;;  %v948_v42 = vmul.f32 %v785_v40, %v1571_v36 }
  0xec   :  { %v842_v50 = vmax.f32 %v834_v60, 0.0  ;;  %v907_v47 = vmax.f32 %v899_v44, 0.0  ;;  %v945_v41 = vmul.f32 %v782_v19, %v1426_v21  ;;  %v713_v22 = vmul.f32 0.8789772, %v705_v3 }
  0xed   :  { %v954_v54 = vadd.f32 %v946_v7, %v938_v53  ;;  %v963_v13 = vsel %vm1517_vm14, %v955_v20, %v931_v6  ;;  %v956_v36 = vadd.f32 %v948_v42, %v940_v15  ;;  %v957_v9 = vadd.f32 %v949_v4, %v941_v25 }
  0xee   :  { %v850_v55 = vmin.f32 %v842_v50, 1.0  ;;  %v915_v1 = vmin.f32 %v907_v47, 1.0  ;;  %v953_v10 = vadd.f32 %v945_v41, %v937_v49  ;;  %v721_v21 = vmax.f32 %v713_v22, 0.0 }
  0xef   :  { %v962_v34 = vsel %vm1473_vm7, %v954_v54, %v930_v45  ;;  %v971_v50 = vmax.f32 %v963_v13, 0.0  ;;  %v964_v58 = vsel %vm1564_vm3, %v956_v36, %v932_v0  ;;  %v965_v49 = vsel %vm1634_vm11, %v957_v9, %v933_v24 }
  0xf0   :  { %858 = vst [vmem:[#allocation7 + $0x30] sm:$0xff] %v850_v55  ;;  %v961_v51 = vsel %vm1414_vm2, %v953_v10, %v929_v32  ;;  %v731_v18 = vmul.f32 %v1315_v12, %v721_v21  ;;  %v970_v28 = vmax.f32 %v962_v34, 0.0  ;;  %v972_v47 = vmax.f32 %v964_v58, 0.0 }
  0xf1   :  { %924 = vst [vmem:[#allocation7 + $0x70] sm:$0xff] %v915_v1  ;;  %v969_v23 = vmax.f32 %v961_v51, 0.0  ;;  %v979_v19 = vmin.f32 %v971_v50, 1.0  ;;  %v973_v52 = vmax.f32 %v965_v49, 0.0 }
  0xf2   :  { %vm739_vm8 = vcmp.gt.f32.partialorder %v731_v18, 0.2  ;;  %vm747_vm13 = vcmp.le.f32.partialorder %v731_v18, 0.25  ;;  %v978_v62 = vmin.f32 %v970_v28, 1.0  ;;  %v980_v46 = vmin.f32 %v972_v47, 1.0 }
  0xf3   :  { %v977_v31 = vmin.f32 %v969_v23, 1.0  ;;  %vm1717_vm2 = vmand %vm739_vm8, %vm747_vm13  ;;  %988 = vst [vmem:[#allocation7 + $0xa0] sm:$0xff] %v979_v19  ;;  %v981_v26 = vmin.f32 %v973_v52, 1.0 }
  0xf4   :  { %v763_v8 = vsel %vm1717_vm2, 0.06872161, %v1192_v43  ;;  %v771_v32 = vsel %vm1717_vm2, 0.65, %v1192_v43  ;;  %v779_v60 = vsel %vm1717_vm2, 0.4, %v1192_v43 }
  0xf5   :  { %v795_v14 = vsub.f32 1.0, %v763_v8  ;;  %v819_v59 = vmul.f32 %v771_v32, %v763_v8  ;;  %v884_v30 = vmul.f32 %v779_v60, %v763_v8  ;;  %986 = vst [vmem:[#allocation7 + $0x90] sm:$0xff] %v977_v31  ;;  %v787_v44 = vsel %vm1717_vm2, 0.25, %v1192_v43 }
  0xf6   :  { %987 = vst [vmem:[#allocation7 + $0x98] sm:$0xff] %v978_v62  ;;  %v950_v45 = vmul.f32 %v787_v44, %v763_v8 }
  0xf7   :  { %v811_v35 = vmul.f32 %v803_v27, %v795_v14  ;;  %v876_v61 = vmul.f32 %v868_v5, %v795_v14  ;;  %v942_v63 = vmul.f32 %v934_v33, %v795_v14  ;;  %989 = vst [vmem:[#allocation7 + $0xa8] sm:$0xff] %v980_v46 }
  0xf8   :  { %990 = vst [vmem:[#allocation7 + $0xb0] sm:$0xff] %v981_v26 }
  0xf9   :  { %v827_v55 = vadd.f32 %v819_v59, %v811_v35  ;;  %v892_v3 = vadd.f32 %v884_v30, %v876_v61  ;;  %v958_v2 = vadd.f32 %v950_v45, %v942_v63 }
  0xfb   :  { %v835_v1 = vsel %vm1717_vm2, %v827_v55, %v803_v27  ;;  %v900_v43 = vsel %vm1717_vm2, %v892_v3, %v868_v5  ;;  %v966_v39 = vsel %vm1717_vm2, %v958_v2, %v934_v33 }
  0xfc   :  { %v843_v16 = vmax.f32 %v835_v1, 0.0  ;;  %v908_v41 = vmax.f32 %v900_v43, 0.0  ;;  %v974_v6 = vmax.f32 %v966_v39, 0.0 }
  0xfe   :  { %v851_v22 = vmin.f32 %v843_v16, 1.0  ;;  %v916_v17 = vmin.f32 %v908_v41, 1.0  ;;  %v982_v37 = vmin.f32 %v974_v6, 1.0 }
 0x100   :  { %859 = vst [vmem:[#allocation7 + $0x38] sm:$0xff] %v851_v22 }
 0x101   :  { %925 = vst [vmem:[#allocation7 + $0x78] sm:$0xff] %v916_v17 }
 0x102   :  { %991 = vst [vmem:[#allocation7 + $0xb8] sm:$0xff] %v982_v37 }
 0x103   :  { %1004 = dma.vmem_to_hbm [thread:$0]  %s997_s21, 3072, %s999_s24, [#allocation4], %s1188_s18, %s1188_s18, %s1189_s19  }
 0x104   :  { %1184 = dma.done.wait [#allocation4], 3072  }
 0x105   :  { %1185 = vsyncadd [#allocation4], 4294964224 }
 0x106   :  { %1009 = vsyncpa [#allocation3], 1 }
 0x107   :  { %1010 = vsyncpa [#allocation4], 1 }
 0x108   :  { %1011 = vsyncpa [#allocation5], 1 }

</bundles_post_ra>
